<compile_context>
chip_gen: v7x
topology: tpu7x:2x2x1
jax: 0.10.0
libtpu: 0.0.40
codegen_flags: <defaults>
</compile_context>

<pallas_src>
import math

import jax
import jax.numpy as jnp
from jax import lax
from jax.experimental import pallas as pl
from jax.experimental.pallas import tpu as pltpu

# ---- small synthetic DeBERTa config ----
B = 2                         # batch
N = 16                        # sequence length
H = 32                        # hidden_size
NH = 4                        # num_attention_heads
DH = H // NH                  # attention_head_size
MAX_REL = 8                   # max_relative_positions (< N so clamping is exercised)
ATT_SPAN = min(N, MAX_REL)    # att_span = min(max(q_len, k_len), max_relative_positions)
P = 2 * ATT_SPAN              # number of relative-position buckets
SCALE_FACTOR = 1 + 2          # 1 + len(['c2p', 'p2c'])
SCALE = math.sqrt(DH * SCALE_FACTOR)
LN_EPS = 1e-12
NEG = -1e30                   # finite "masked" score (safer than finfo.min, same result)

# Tile sizes.  Toy values; for production (N=512, H=768, DH=64) use TQ=TK=128..256
# in bf16 (v7x: ~half the kv tile of v6e -- only 64 MiB VMEM; v5e: bias to larger
# kv tiles to amortize per-step overhead) and raise vmem_limit_bytes via
# pltpu.CompilerParams if the scoped default is exceeded.
TQ = 8                        # query tile
TK = 8                        # kv tile
TM = 16                       # row tile for the projection / output kernels
COMPUTE_DTYPE = jnp.float32   # set jnp.bfloat16 for production shapes (keep f32 acc)

assert H % NH == 0 and N % TQ == 0 and N % TK == 0 and (B * N) % TM == 0


# --------------------------------------------------------------------------
# Kernel 1/2: fused linear projection  (out = x @ w + b), row-tiled.
# --------------------------------------------------------------------------
def _linear_kernel(x_ref, w_ref, b_ref, o_ref):
    acc = lax.dot_general(x_ref[...], w_ref[...], (((1,), (0,)), ((), ())),
                          preferred_element_type=jnp.float32)
    o_ref[...] = (acc + b_ref[...]).astype(o_ref.dtype)


def _linear(x, w, b, out_dtype, tm):
    m, k = x.shape
    _, o = w.shape
    assert m % tm == 0
    return pl.pallas_call(
        _linear_kernel,
        out_shape=jax.ShapeDtypeStruct((m, o), out_dtype),
        grid=(m // tm,),
        in_specs=[
            pl.BlockSpec((tm, k), lambda i: (i, 0)),
            pl.BlockSpec((k, o), lambda i: (0, 0)),   # weights resident across steps
            pl.BlockSpec((1, o), lambda i: (0, 0)),
        ],
        out_specs=pl.BlockSpec((tm, o), lambda i: (i, 0)),
        compiler_params=pltpu.CompilerParams(dimension_semantics=("parallel",)),
    )(x, w, b)


# --------------------------------------------------------------------------
# Kernel 3: flash-style disentangled self-attention (one (b, h) pair per grid
# point, online softmax over kv tiles).
# --------------------------------------------------------------------------
def _flash_attn_kernel(q_ref, k_ref, v_ref, pk_ref, pq_ref, vq_ref, vk_ref,
                       o_ref, m_sc, l_sc, acc_sc):
    qi = pl.program_id(2)
    ki = pl.program_id(3)

    @pl.when(ki == 0)
    def _():
        m_sc[...] = jnp.full_like(m_sc, NEG)
        l_sc[...] = jnp.zeros_like(l_sc)
        acc_sc[...] = jnp.zeros_like(acc_sc)

    q = q_ref[0, 0]          # (TQ, DH)   (q already scaled by 1/sqrt(d*scale_factor))
    k = k_ref[0, 0]          # (TK, DH)
    v = v_ref[0, 0]          # (TK, DH)
    pos_k = pk_ref[0]        # (P, DH)
    pos_q = pq_ref[0]        # (P, DH)    (already scaled)
    vq = vq_ref[0]           # (TQ, 1)    f32 validity of the query rows
    vk = vk_ref[0, 0]        # (1, TK)    f32 validity of the kv columns

    cdt = q.dtype
    f32 = jnp.float32
    cdims = (((1,), (1,)), ((), ()))   # contract the DH dim of both operands

    # content->content scores and the two disentangled pre-gather tables (MXU).
    s = lax.dot_general(q, k, cdims, preferred_element_type=f32)             # (TQ, TK)
    c2p_pre = lax.dot_general(q, pos_k, cdims, preferred_element_type=f32)   # (TQ, P)
    p2c_pre = lax.dot_general(k, pos_q, cdims, preferred_element_type=f32)   # (TK, P)

    # Relative-position bucket for this tile: clamp(i - j + span, 0, P-1),
    # i = qi*TQ + il, j = ki*TK + jl.  Built from cheap iota compares.
    base = qi * TQ - ki * TK + ATT_SPAN
    ii = lax.broadcasted_iota(jnp.int32, (TQ, TK), 0)
    jj = lax.broadcasted_iota(jnp.int32, (TQ, TK), 1)
    bucket = jnp.clip(base + ii - jj, 0, P - 1)                 # (TQ, TK)
    iit = lax.broadcasted_iota(jnp.int32, (TK, TQ), 1)
    jjt = lax.broadcasted_iota(jnp.int32, (TK, TQ), 0)
    bucket_t = jnp.clip(base + iit - jjt, 0, P - 1)             # (TK, TQ)
    p_ids = lax.broadcasted_iota(jnp.int32, (P, 1), 0)          # (P, 1)

    # torch.gather realized as a per-tile one-hot MXU contraction over P
    # (token axis is the dot_general batch dim, P is contracted).
    # TODO(synk): for production P (~1024) replace with the windowed /
    # relative-shift (pltpu.roll) gather instead of a (TQ,P,TK) one-hot.
    oh_c2p = (bucket[:, None, :] == p_ids[None, :, :]).astype(cdt)    # (TQ, P, TK)
    oh_p2c = (bucket_t[:, None, :] == p_ids[None, :, :]).astype(cdt)  # (TK, P, TQ)
    bdims = (((2,), (1,)), ((0,), (0,)))
    c2p = lax.dot_general(c2p_pre.astype(cdt)[:, None, :], oh_c2p, bdims,
                          preferred_element_type=f32)[:, 0, :]        # (TQ, TK)
    p2c_t = lax.dot_general(p2c_pre.astype(cdt)[:, None, :], oh_p2c, bdims,
                            preferred_element_type=f32)[:, 0, :]      # (TK, TQ)
    s = s + c2p + jnp.transpose(p2c_t)

    # XSoftmax in online/flash form: masked scores -> -1e30, masked probs -> 0
    # (so fully masked rows produce a zero context, like the reference module).
    maskf = vq * vk                                   # (TQ, TK) in {0, 1}
    s = jnp.where(maskf > 0.0, s, NEG)

    m_prev = m_sc[...]
    m_new = jnp.maximum(m_prev, jnp.max(s, axis=-1, keepdims=True))
    alpha = jnp.exp(m_prev - m_new)
    p = jnp.exp(s - m_new) * maskf
    l_sc[...] = alpha * l_sc[...] + jnp.sum(p, axis=-1, keepdims=True)
    acc_sc[...] = alpha * acc_sc[...] + lax.dot_general(
        p.astype(cdt), v, (((1,), (0,)), ((), ())), preferred_element_type=f32)
    m_sc[...] = m_new

    @pl.when(ki == pl.num_programs(3) - 1)
    def _():
        l = l_sc[...]
        denom = jnp.where(l == 0.0, 1.0, l)           # fully-masked rows -> 0
        o_ref[0, 0] = (acc_sc[...] * pl.reciprocal(denom, approx=True)
                       ).astype(o_ref.dtype)


def _flash_attention(q, k, v, pos_k, pos_q, valid_q, valid_k):
    # q/k/v: (B, NH, N, DH); pos_k/pos_q: (NH, P, DH)
    # valid_q: (B, N, 1) f32; valid_k: (B, N//TK, 1, TK) f32
    n_q, n_kv = N // TQ, N // TK
    return pl.pallas_call(
        _flash_attn_kernel,
        out_shape=jax.ShapeDtypeStruct((B, NH, N, DH), jnp.float32),
        grid=(B, NH, n_q, n_kv),
        in_specs=[
            pl.BlockSpec((1, 1, TQ, DH), lambda b, h, i, j: (b, h, i, 0)),
            pl.BlockSpec((1, 1, TK, DH), lambda b, h, i, j: (b, h, j, 0)),
            pl.BlockSpec((1, 1, TK, DH), lambda b, h, i, j: (b, h, j, 0)),
            pl.BlockSpec((1, P, DH), lambda b, h, i, j: (h, 0, 0)),
            pl.BlockSpec((1, P, DH), lambda b, h, i, j: (h, 0, 0)),
            pl.BlockSpec((1, TQ, 1), lambda b, h, i, j: (b, i, 0)),
            pl.BlockSpec((1, 1, 1, TK), lambda b, h, i, j: (b, j, 0, 0)),
        ],
        out_specs=pl.BlockSpec((1, 1, TQ, DH), lambda b, h, i, j: (b, h, i, 0)),
        scratch_shapes=[
            pltpu.VMEM((TQ, 1), jnp.float32),   # running max
            pltpu.VMEM((TQ, 1), jnp.float32),   # running denominator
            pltpu.VMEM((TQ, DH), jnp.float32),  # running context accumulator
        ],
        compiler_params=pltpu.CompilerParams(
            dimension_semantics=("parallel", "parallel", "parallel", "arbitrary")),
    )(q, k, v, pos_k, pos_q, valid_q, valid_k)


# --------------------------------------------------------------------------
# Kernel 4: output dense + residual + DebertaLayerNorm (TF style), row-tiled.
# --------------------------------------------------------------------------
def _out_ln_kernel(ctx_ref, res_ref, w_ref, b_ref, g_ref, beta_ref, o_ref):
    f32 = jnp.float32
    proj = lax.dot_general(ctx_ref[...], w_ref[...], (((1,), (0,)), ((), ())),
                           preferred_element_type=f32) + b_ref[...]
    add = proj + res_ref[...].astype(f32)
    mean = jnp.mean(add, axis=-1, keepdims=True)
    var = jnp.mean((add - mean) ** 2, axis=-1, keepdims=True)
    normed = (add - mean) * lax.rsqrt(var + LN_EPS)
    o_ref[...] = (g_ref[...] * normed + beta_ref[...]).astype(o_ref.dtype)


def _out_ln(ctx2, x2, w, b, g, beta):
    m = ctx2.shape[0]
    return pl.pallas_call(
        _out_ln_kernel,
        out_shape=jax.ShapeDtypeStruct((m, H), jnp.float32),
        grid=(m // TM,),
        in_specs=[
            pl.BlockSpec((TM, H), lambda i: (i, 0)),
            pl.BlockSpec((TM, H), lambda i: (i, 0)),
            pl.BlockSpec((H, H), lambda i: (0, 0)),
            pl.BlockSpec((1, H), lambda i: (0, 0)),
            pl.BlockSpec((1, H), lambda i: (0, 0)),
            pl.BlockSpec((1, H), lambda i: (0, 0)),
        ],
        out_specs=pl.BlockSpec((TM, H), lambda i: (i, 0)),
        compiler_params=pltpu.CompilerParams(dimension_semantics=("parallel",)),
    )(ctx2, x2, w, b, g, beta)


# --------------------------------------------------------------------------
# Full module wrapper.
# --------------------------------------------------------------------------
# TODO(synk): arbitrary (B,N,N) attention masks would need a mask-tile input;
# this wrapper takes the standard HF per-token validity mask (B,N) from which
# DeBERTa's extended mask valid_i*valid_j is reproduced in-kernel.
@jax.jit
def deberta_attention(hidden_states, valid_mask, params):
    cdt = COMPUTE_DTYPE
    x2 = hidden_states.reshape(B * N, H)

    # in_proj columns are laid out per-head as [q_h | k_h | v_h]; regroup into a
    # single (H, 3H) weight [q_all | k_all | v_all] with the softmax scale folded
    # into the query columns and bias (and into pos_q below).
    w_r = params['w_in'].reshape(H, NH, 3, DH)
    w_q = w_r[:, :, 0, :].reshape(H, H) / SCALE
    w_k = w_r[:, :, 1, :].reshape(H, H)
    w_v = w_r[:, :, 2, :].reshape(H, H)
    w_qkv = jnp.concatenate([w_q, w_k, w_v], axis=1)
    b_qkv = jnp.concatenate([params['q_bias'].reshape(1, H) / SCALE,
                             jnp.zeros((1, H), jnp.float32),
                             params['v_bias'].reshape(1, H)], axis=1)

    w_pos = jnp.concatenate([params['w_pk'], params['w_pq'] / SCALE], axis=1)
    b_pos = jnp.concatenate([jnp.zeros((1, H), jnp.float32),
                             params['b_pq'].reshape(1, H) / SCALE], axis=1)
    rel = params['rel_emb'][MAX_REL - ATT_SPAN:MAX_REL + ATT_SPAN]   # (P, H)

    # Kernel 1: fused QKV projection (one lane-dense (BN,H)x(H,3H) matmul).
    qkv = _linear(x2.astype(cdt), w_qkv.astype(cdt), b_qkv, cdt, TM)          # (BN, 3H)
    # Kernel 2: fused positional projections ((P,H)x(H,2H)).
    poskq = _linear(rel.astype(cdt), w_pos.astype(cdt), b_pos, cdt, min(TM, P))  # (P, 2H)

    def to_heads(t):   # (BN, H) -> (B, NH, N, DH)   (layout plumbing only)
        return t.reshape(B, N, NH, DH).transpose(0, 2, 1, 3)

    q = to_heads(qkv[:, :H])
    k = to_heads(qkv[:, H:2 * H])
    v = to_heads(qkv[:, 2 * H:])
    pos_k = poskq[:, :H].reshape(P, NH, DH).transpose(1, 0, 2)   # (NH, P, DH)
    pos_q = poskq[:, H:].reshape(P, NH, DH).transpose(1, 0, 2)

    valid_f = valid_mask.astype(jnp.float32)
    valid_q = valid_f.reshape(B, N, 1)
    valid_k = valid_f.reshape(B, N // TK, 1, TK)

    # Kernel 3: flash-style disentangled attention.
    ctx = _flash_attention(q, k, v, pos_k, pos_q, valid_q, valid_k)   # (B, NH, N, DH)
    ctx2 = ctx.transpose(0, 2, 1, 3).reshape(B * N, H)                # lane-dense (BN, H)

    # Kernel 4: output dense (head reduction inside the MXU contraction) +
    # residual with the query states + TF-style LayerNorm.
    out2 = _out_ln(ctx2.astype(cdt), x2, params['w_out'].astype(cdt),
                   params['b_out'].reshape(1, H), params['ln_w'].reshape(1, H),
                   params['ln_b'].reshape(1, H))
    return out2.reshape(B, N, H)


# --------------------------------------------------------------------------
# Pure-JAX reference mirroring the PyTorch module (eval mode).
# --------------------------------------------------------------------------
def reference(x, valid, params):
    qkv = x @ params['w_in']
    qkv = qkv.reshape(B, N, NH, 3 * DH).transpose(0, 2, 1, 3)
    q, k, v = jnp.split(qkv, 3, axis=-1)
    q = (q + params['q_bias'].reshape(1, NH, 1, DH)) / SCALE
    v = v + params['v_bias'].reshape(1, NH, 1, DH)

    rel = params['rel_emb'][MAX_REL - ATT_SPAN:MAX_REL + ATT_SPAN]
    pos_k = (rel @ params['w_pk']).reshape(P, NH, DH).transpose(1, 0, 2)
    pos_q = ((rel @ params['w_pq'] + params['b_pq']).reshape(P, NH, DH)
             .transpose(1, 0, 2)) / SCALE

    scores = jnp.einsum('bhid,bhjd->bhij', q, k)
    bucket = jnp.clip(jnp.arange(N)[:, None] - jnp.arange(N)[None, :] + ATT_SPAN,
                      0, P - 1)                                        # (N, N)
    c2p = jnp.einsum('bhid,hijd->bhij', q, pos_k[:, bucket])
    p2c = jnp.einsum('bhjd,hijd->bhij', k, pos_q[:, bucket])
    scores = scores + c2p + p2c

    mask = valid[:, None, :, None] * valid[:, None, None, :]          # (B,1,N,N)
    rmask = mask == 0
    scores = jnp.where(rmask, jnp.finfo(jnp.float32).min, scores)
    probs = jax.nn.softmax(scores, axis=-1)
    probs = jnp.where(rmask, 0.0, probs)

    ctx = jnp.einsum('bhij,bhjd->bhid', probs, v)
    ctx = ctx.transpose(0, 2, 1, 3).reshape(B, N, H)
    proj = ctx @ params['w_out'] + params['b_out']
    add = proj + x
    mean = add.mean(-1, keepdims=True)
    var = ((add - mean) ** 2).mean(-1, keepdims=True)
    normed = (add - mean) / jnp.sqrt(var + LN_EPS)
    return params['ln_w'] * normed + params['ln_b']


if __name__ == "__main__":
    key = jax.random.PRNGKey(0)
    ks = jax.random.split(key, 12)
    init = lambda kk, shape: 0.02 * jax.random.normal(kk, shape, jnp.float32)
    params = {
        'w_in':    init(ks[0], (H, 3 * H)),   # in_proj.weight.T (per-head [q|k|v] columns)
        'q_bias':  init(ks[1], (1, H)),
        'v_bias':  init(ks[2], (1, H)),
        'w_pk':    init(ks[3], (H, H)),       # pos_proj.weight.T (no bias)
        'w_pq':    init(ks[4], (H, H)),       # pos_q_proj.weight.T
        'b_pq':    init(ks[5], (1, H)),       # pos_q_proj.bias
        'w_out':   init(ks[6], (H, H)),       # output.dense.weight.T
        'b_out':   init(ks[7], (1, H)),       # output.dense.bias
        'ln_w':    jnp.ones((1, H), jnp.float32),
        'ln_b':    jnp.zeros((1, H), jnp.float32),
        'rel_emb': init(ks[8], (2 * MAX_REL, H)),
    }
    x = jax.random.normal(ks[9], (B, N, H), jnp.float32)
    lengths = jnp.array([N, N - 5])
    valid = (jnp.arange(N)[None, :] < lengths[:, None]).astype(jnp.int32)   # (B, N)

    out = jax.block_until_ready(deberta_attention(x, valid, params))
    ref = reference(x, valid, params)
    max_err = float(jnp.max(jnp.abs(out - ref)))
    assert jnp.allclose(out, ref, atol=2e-3, rtol=2e-3), f"max_err={max_err}"
    print("KERNEL_OK")
</pallas_src>

<mosaic_0001>
module attributes {stable_mosaic.version = 11 : i64} {
  func.func @_linear_kernel(%arg0: i32, %arg1: memref<16x32xf32, #tpu.memory_space<vmem>>, %arg2: memref<32x64xf32, #tpu.memory_space<vmem>>, %arg3: memref<1x64xf32, #tpu.memory_space<vmem>>, %arg4: memref<16x64xf32, #tpu.memory_space<vmem>>) attributes {dimension_semantics = [#tpu.dimension_semantics<parallel>], iteration_bounds = array<i64: 1>, scalar_prefetch = 0 : i64, scratch_operands = 0 : i64, tpu.core_type = #tpu.core_type<tc>, window_params = [{transform_indices = @transform_0, window_bounds = array<i64: 16, 32>}, {pipeline_mode = #tpu.pipeline_mode<synchronous>, transform_indices = @transform_1, window_bounds = array<i64: 32, 64>}, {pipeline_mode = #tpu.pipeline_mode<synchronous>, transform_indices = @transform_2, window_bounds = array<i64: 1, 64>}, {transform_indices = @transform_3, window_bounds = array<i64: 16, 64>}]} {
    %c0 = arith.constant 0 : index
    %c0_0 = arith.constant 0 : index
    %0 = vector.load %arg1[%c0, %c0_0] : memref<16x32xf32, #tpu.memory_space<vmem>>, vector<16x32xf32>
    %c0_1 = arith.constant 0 : index
    %c0_2 = arith.constant 0 : index
    %1 = vector.load %arg2[%c0_1, %c0_2] : memref<32x64xf32, #tpu.memory_space<vmem>>, vector<32x64xf32>
    %cst = arith.constant dense<0.000000e+00> : vector<16x64xf32>
    %2 = tpu.matmul %0, %1, %cst {dimension_numbers = #tpu.dot_dimension_numbers<[1], [0], [0], [1], [0, 0, 1, 1], [], []>} : vector<16x32xf32>, vector<32x64xf32>, vector<16x64xf32> -> vector<16x64xf32>
    %c0_3 = arith.constant 0 : index
    %c0_4 = arith.constant 0 : index
    %3 = vector.load %arg3[%c0_3, %c0_4] : memref<1x64xf32, #tpu.memory_space<vmem>>, vector<1x64xf32>
    %4 = vector.broadcast %3 : vector<1x64xf32> to vector<16x64xf32>
    %5 = arith.addf %2, %4 : vector<16x64xf32>
    %c0_5 = arith.constant 0 : index
    %c0_6 = arith.constant 0 : index
    %6 = vector.load %arg4[%c0_5, %c0_6] : memref<16x64xf32, #tpu.memory_space<vmem>>, vector<16x64xf32>
    tpu.vector_store %arg4[%c0_5, %c0_6], %5 {strides = array<i32>} : memref<16x64xf32, #tpu.memory_space<vmem>>, vector<16x64xf32>,
    return
  }
  func.func @transform_0(%arg0: i32) -> (i32, i32) {
    %c0_i32 = arith.constant 0 : i32
    %c0_i32_0 = arith.constant 0 : i32
    return %arg0, %c0_i32 : i32, i32
  }
  func.func @transform_1(%arg0: i32) -> (i32, i32) {
    %c0_i32 = arith.constant 0 : i32
    %c0_i32_0 = arith.constant 0 : i32
    %c0_i32_1 = arith.constant 0 : i32
    return %c0_i32, %c0_i32_0 : i32, i32
  }
  func.func @transform_2(%arg0: i32) -> (i32, i32) {
    %c0_i32 = arith.constant 0 : i32
    %c0_i32_0 = arith.constant 0 : i32
    %c0_i32_1 = arith.constant 0 : i32
    return %c0_i32, %c0_i32_0 : i32, i32
  }
  func.func @transform_3(%arg0: i32) -> (i32, i32) {
    %c0_i32 = arith.constant 0 : i32
    %c0_i32_0 = arith.constant 0 : i32
    return %arg0, %c0_i32 : i32, i32
  }
}

module attributes {stable_mosaic.version = 11 : i64} {
  func.func @_linear_kernel(%arg0: i32, %arg1: memref<16x32xf32, #tpu.memory_space<vmem>>, %arg2: memref<32x96xf32, #tpu.memory_space<vmem>>, %arg3: memref<1x96xf32, #tpu.memory_space<vmem>>, %arg4: memref<16x96xf32, #tpu.memory_space<vmem>>) attributes {dimension_semantics = [#tpu.dimension_semantics<parallel>], iteration_bounds = array<i64: 2>, scalar_prefetch = 0 : i64, scratch_operands = 0 : i64, tpu.core_type = #tpu.core_type<tc>, window_params = [{transform_indices = @transform_0, window_bounds = array<i64: 16, 32>}, {pipeline_mode = #tpu.pipeline_mode<synchronous>, transform_indices = @transform_1, window_bounds = array<i64: 32, 96>}, {pipeline_mode = #tpu.pipeline_mode<synchronous>, transform_indices = @transform_2, window_bounds = array<i64: 1, 96>}, {transform_indices = @transform_3, window_bounds = array<i64: 16, 96>}]} {
    %c0 = arith.constant 0 : index
    %c0_0 = arith.constant 0 : index
    %0 = vector.load %arg1[%c0, %c0_0] : memref<16x32xf32, #tpu.memory_space<vmem>>, vector<16x32xf32>
    %c0_1 = arith.constant 0 : index
    %c0_2 = arith.constant 0 : index
    %1 = vector.load %arg2[%c0_1, %c0_2] : memref<32x96xf32, #tpu.memory_space<vmem>>, vector<32x96xf32>
    %cst = arith.constant dense<0.000000e+00> : vector<16x96xf32>
    %2 = tpu.matmul %0, %1, %cst {dimension_numbers = #tpu.dot_dimension_numbers<[1], [0], [0], [1], [0, 0, 1, 1], [], []>} : vector<16x32xf32>, vector<32x96xf32>, vector<16x96xf32> -> vector<16x96xf32>
    %c0_3 = arith.constant 0 : index
    %c0_4 = arith.constant 0 : index
    %3 = vector.load %arg3[%c0_3, %c0_4] : memref<1x96xf32, #tpu.memory_space<vmem>>, vector<1x96xf32>
    %4 = vector.broadcast %3 : vector<1x96xf32> to vector<16x96xf32>
    %5 = arith.addf %2, %4 : vector<16x96xf32>
    %c0_5 = arith.constant 0 : index
    %c0_6 = arith.constant 0 : index
    %6 = vector.load %arg4[%c0_5, %c0_6] : memref<16x96xf32, #tpu.memory_space<vmem>>, vector<16x96xf32>
    tpu.vector_store %arg4[%c0_5, %c0_6], %5 {strides = array<i32>} : memref<16x96xf32, #tpu.memory_space<vmem>>, vector<16x96xf32>,
    return
  }
  func.func @transform_0(%arg0: i32) -> (i32, i32) {
    %c0_i32 = arith.constant 0 : i32
    %c0_i32_0 = arith.constant 0 : i32
    return %arg0, %c0_i32 : i32, i32
  }
  func.func @transform_1(%arg0: i32) -> (i32, i32) {
    %c0_i32 = arith.constant 0 : i32
    %c0_i32_0 = arith.constant 0 : i32
    %c0_i32_1 = arith.constant 0 : i32
    return %c0_i32, %c0_i32_0 : i32, i32
  }
  func.func @transform_2(%arg0: i32) -> (i32, i32) {
    %c0_i32 = arith.constant 0 : i32
    %c0_i32_0 = arith.constant 0 : i32
    %c0_i32_1 = arith.constant 0 : i32
    return %c0_i32, %c0_i32_0 : i32, i32
  }
  func.func @transform_3(%arg0: i32) -> (i32, i32) {
    %c0_i32 = arith.constant 0 : i32
    %c0_i32_0 = arith.constant 0 : i32
    return %arg0, %c0_i32 : i32, i32
  }
}

module attributes {stable_mosaic.version = 11 : i64} {
  func.func @_out_ln_kernel(%arg0: i32, %arg1: memref<16x32xf32, #tpu.memory_space<vmem>>, %arg2: memref<16x32xf32, #tpu.memory_space<vmem>>, %arg3: memref<32x32xf32, #tpu.memory_space<vmem>>, %arg4: memref<1x32xf32, #tpu.memory_space<vmem>>, %arg5: memref<1x32xf32, #tpu.memory_space<vmem>>, %arg6: memref<1x32xf32, #tpu.memory_space<vmem>>, %arg7: memref<16x32xf32, #tpu.memory_space<vmem>>) attributes {dimension_semantics = [#tpu.dimension_semantics<parallel>], iteration_bounds = array<i64: 2>, scalar_prefetch = 0 : i64, scratch_operands = 0 : i64, tpu.core_type = #tpu.core_type<tc>, window_params = [{transform_indices = @transform_0, window_bounds = array<i64: 16, 32>}, {transform_indices = @transform_1, window_bounds = array<i64: 16, 32>}, {pipeline_mode = #tpu.pipeline_mode<synchronous>, transform_indices = @transform_2, window_bounds = array<i64: 32, 32>}, {pipeline_mode = #tpu.pipeline_mode<synchronous>, transform_indices = @transform_3, window_bounds = array<i64: 1, 32>}, {pipeline_mode = #tpu.pipeline_mode<synchronous>, transform_indices = @transform_4, window_bounds = array<i64: 1, 32>}, {pipeline_mode = #tpu.pipeline_mode<synchronous>, transform_indices = @transform_5, window_bounds = array<i64: 1, 32>}, {transform_indices = @transform_6, window_bounds = array<i64: 16, 32>}]} {
    %c0 = arith.constant 0 : index
    %c0_0 = arith.constant 0 : index
    %0 = vector.load %arg1[%c0, %c0_0] : memref<16x32xf32, #tpu.memory_space<vmem>>, vector<16x32xf32>
    %c0_1 = arith.constant 0 : index
    %c0_2 = arith.constant 0 : index
    %1 = vector.load %arg3[%c0_1, %c0_2] : memref<32x32xf32, #tpu.memory_space<vmem>>, vector<32x32xf32>
    %cst = arith.constant dense<0.000000e+00> : vector<16x32xf32>
    %2 = tpu.matmul %0, %1, %cst {dimension_numbers = #tpu.dot_dimension_numbers<[1], [0], [0], [1], [0, 0, 1, 1], [], []>} : vector<16x32xf32>, vector<32x32xf32>, vector<16x32xf32> -> vector<16x32xf32>
    %c0_3 = arith.constant 0 : index
    %c0_4 = arith.constant 0 : index
    %3 = vector.load %arg4[%c0_3, %c0_4] : memref<1x32xf32, #tpu.memory_space<vmem>>, vector<1x32xf32>
    %4 = vector.broadcast %3 : vector<1x32xf32> to vector<16x32xf32>
    %5 = arith.addf %2, %4 : vector<16x32xf32>
    %c0_5 = arith.constant 0 : index
    %c0_6 = arith.constant 0 : index
    %6 = vector.load %arg2[%c0_5, %c0_6] : memref<16x32xf32, #tpu.memory_space<vmem>>, vector<16x32xf32>
    %7 = arith.addf %5, %6 : vector<16x32xf32>
    %cst_7 = arith.constant dense<0.000000e+00> : vector<16xf32>
    %8 = vector.multi_reduction <add>, %7, %cst_7 [1] : vector<16x32xf32> to vector<16xf32>
    %9 = vector.shape_cast %8 : vector<16xf32> to vector<16x1xf32>
    %cst_8 = arith.constant 3.200000e+01 : f32
    %10 = vector.broadcast %cst_8 : f32 to vector<16x1xf32>
    %11 = arith.divf %9, %10 : vector<16x1xf32>
    %12 = vector.broadcast %11 : vector<16x1xf32> to vector<16x32xf32>
    %13 = arith.subf %7, %12 : vector<16x32xf32>
    %14 = arith.mulf %13, %13 : vector<16x32xf32>
    %cst_9 = arith.constant dense<0.000000e+00> : vector<16xf32>
    %15 = vector.multi_reduction <add>, %14, %cst_9 [1] : vector<16x32xf32> to vector<16xf32>
    %16 = vector.shape_cast %15 : vector<16xf32> to vector<16x1xf32>
    %cst_10 = arith.constant 3.200000e+01 : f32
    %17 = vector.broadcast %cst_10 : f32 to vector<16x1xf32>
    %18 = arith.divf %16, %17 : vector<16x1xf32>
    %19 = vector.broadcast %11 : vector<16x1xf32> to vector<16x32xf32>
    %20 = arith.subf %7, %19 : vector<16x32xf32>
    %cst_11 = arith.constant 9.99999996E-13 : f32
    %21 = vector.broadcast %cst_11 : f32 to vector<16x1xf32>
    %22 = arith.addf %18, %21 : vector<16x1xf32>
    %23 = math.rsqrt %22 : vector<16x1xf32>
    %24 = vector.broadcast %23 : vector<16x1xf32> to vector<16x32xf32>
    %25 = arith.mulf %20, %24 : vector<16x32xf32>
    %c0_12 = arith.constant 0 : index
    %c0_13 = arith.constant 0 : index
    %26 = vector.load %arg5[%c0_12, %c0_13] : memref<1x32xf32, #tpu.memory_space<vmem>>, vector<1x32xf32>
    %27 = vector.broadcast %26 : vector<1x32xf32> to vector<16x32xf32>
    %28 = arith.mulf %27, %25 : vector<16x32xf32>
    %c0_14 = arith.constant 0 : index
    %c0_15 = arith.constant 0 : index
    %29 = vector.load %arg6[%c0_14, %c0_15] : memref<1x32xf32, #tpu.memory_space<vmem>>, vector<1x32xf32>
    %30 = vector.broadcast %29 : vector<1x32xf32> to vector<16x32xf32>
    %31 = arith.addf %28, %30 : vector<16x32xf32>
    %c0_16 = arith.constant 0 : index
    %c0_17 = arith.constant 0 : index
    %32 = vector.load %arg7[%c0_16, %c0_17] : memref<16x32xf32, #tpu.memory_space<vmem>>, vector<16x32xf32>
    tpu.vector_store %arg7[%c0_16, %c0_17], %31 {strides = array<i32>} : memref<16x32xf32, #tpu.memory_space<vmem>>, vector<16x32xf32>,
    return
  }
  func.func @transform_0(%arg0: i32) -> (i32, i32) {
    %c0_i32 = arith.constant 0 : i32
    %c0_i32_0 = arith.constant 0 : i32
    return %arg0, %c0_i32 : i32, i32
  }
  func.func @transform_1(%arg0: i32) -> (i32, i32) {
    %c0_i32 = arith.constant 0 : i32
    %c0_i32_0 = arith.constant 0 : i32
    return %arg0, %c0_i32 : i32, i32
  }
  func.func @transform_2(%arg0: i32) -> (i32, i32) {
    %c0_i32 = arith.constant 0 : i32
    %c0_i32_0 = arith.constant 0 : i32
    %c0_i32_1 = arith.constant 0 : i32
    return %c0_i32, %c0_i32_0 : i32, i32
  }
  func.func @transform_3(%arg0: i32) -> (i32, i32) {
    %c0_i32 = arith.constant 0 : i32
    %c0_i32_0 = arith.constant 0 : i32
    %c0_i32_1 = arith.constant 0 : i32
    return %c0_i32, %c0_i32_0 : i32, i32
  }
  func.func @transform_4(%arg0: i32) -> (i32, i32) {
    %c0_i32 = arith.constant 0 : i32
    %c0_i32_0 = arith.constant 0 : i32
    %c0_i32_1 = arith.constant 0 : i32
    return %c0_i32, %c0_i32_0 : i32, i32
  }
  func.func @transform_5(%arg0: i32) -> (i32, i32) {
    %c0_i32 = arith.constant 0 : i32
    %c0_i32_0 = arith.constant 0 : i32
    %c0_i32_1 = arith.constant 0 : i32
    return %c0_i32, %c0_i32_0 : i32, i32
  }
  func.func @transform_6(%arg0: i32) -> (i32, i32) {
    %c0_i32 = arith.constant 0 : i32
    %c0_i32_0 = arith.constant 0 : i32
    return %arg0, %c0_i32 : i32, i32
  }
}

module attributes {stable_mosaic.version = 11 : i64} {
  func.func @_flash_attn_kernel(%arg0: i32, %arg1: i32, %arg2: i32, %arg3: i32, %arg4: memref<1x1x8x8xf32, #tpu.memory_space<vmem>>, %arg5: memref<1x1x8x8xf32, #tpu.memory_space<vmem>>, %arg6: memref<1x1x8x8xf32, #tpu.memory_space<vmem>>, %arg7: memref<1x16x8xf32, #tpu.memory_space<vmem>>, %arg8: memref<1x16x8xf32, #tpu.memory_space<vmem>>, %arg9: memref<1x8x1xf32, #tpu.memory_space<vmem>>, %arg10: memref<1x1x1x8xf32, #tpu.memory_space<vmem>>, %arg11: memref<1x1x8x8xf32, #tpu.memory_space<vmem>>, %arg12: memref<8x1xf32, #tpu.memory_space<vmem>>, %arg13: memref<8x1xf32, #tpu.memory_space<vmem>>, %arg14: memref<8x8xf32, #tpu.memory_space<vmem>>) attributes {dimension_semantics = [#tpu.dimension_semantics<parallel>, #tpu.dimension_semantics<parallel>, #tpu.dimension_semantics<parallel>, #tpu.dimension_semantics<arbitrary>], iteration_bounds = array<i64: 2, 4, 2, 2>, scalar_prefetch = 0 : i64, scratch_operands = 3 : i64, tpu.core_type = #tpu.core_type<tc>, window_params = [{transform_indices = @transform_0, window_bounds = array<i64: 1, 1, 8, 8>}, {transform_indices = @transform_1, window_bounds = array<i64: 1, 1, 8, 8>}, {transform_indices = @transform_2, window_bounds = array<i64: 1, 1, 8, 8>}, {transform_indices = @transform_3, window_bounds = array<i64: 1, 16, 8>}, {transform_indices = @transform_4, window_bounds = array<i64: 1, 16, 8>}, {transform_indices = @transform_5, window_bounds = array<i64: 1, 8, 1>}, {transform_indices = @transform_6, window_bounds = array<i64: 1, 1, 1, 8>}, {transform_indices = @transform_7, window_bounds = array<i64: 1, 1, 8, 8>}]} {
    %c0_i32 = arith.constant 0 : i32
    %0 = arith.cmpi eq, %arg3, %c0_i32 : i32
    %1 = arith.extui %0 : i1 to i32
    %c0_i32_0 = arith.constant 0 : i32
    %2 = arith.cmpi ne, %1, %c0_i32_0 : i32
    scf.if %2 {
      %cst_52 = arith.constant -1.000000e+30 : f32
      %99 = vector.broadcast %cst_52 : f32 to vector<8x1xf32>
      %c0_53 = arith.constant 0 : index
      %c0_54 = arith.constant 0 : index
      %100 = vector.load %arg12[%c0_53, %c0_54] : memref<8x1xf32, #tpu.memory_space<vmem>>, vector<8x1xf32>
      tpu.vector_store %arg12[%c0_53, %c0_54], %99 {strides = array<i32>} : memref<8x1xf32, #tpu.memory_space<vmem>>, vector<8x1xf32>,
      %cst_55 = arith.constant 0.000000e+00 : f32
      %101 = vector.broadcast %cst_55 : f32 to vector<8x1xf32>
      %c0_56 = arith.constant 0 : index
      %c0_57 = arith.constant 0 : index
      %102 = vector.load %arg13[%c0_56, %c0_57] : memref<8x1xf32, #tpu.memory_space<vmem>>, vector<8x1xf32>
      tpu.vector_store %arg13[%c0_56, %c0_57], %101 {strides = array<i32>} : memref<8x1xf32, #tpu.memory_space<vmem>>, vector<8x1xf32>,
      %cst_58 = arith.constant 0.000000e+00 : f32
      %103 = vector.broadcast %cst_58 : f32 to vector<8x8xf32>
      %c0_59 = arith.constant 0 : index
      %c0_60 = arith.constant 0 : index
      %104 = vector.load %arg14[%c0_59, %c0_60] : memref<8x8xf32, #tpu.memory_space<vmem>>, vector<8x8xf32>
      tpu.vector_store %arg14[%c0_59, %c0_60], %103 {strides = array<i32>} : memref<8x8xf32, #tpu.memory_space<vmem>>, vector<8x8xf32>,
    } else {
    }
    %c0 = arith.constant 0 : index
    %c0_1 = arith.constant 0 : index
    %c0_2 = arith.constant 0 : index
    %c0_3 = arith.constant 0 : index
    %3 = vector.load %arg4[%c0, %c0_1, %c0_2, %c0_3] : memref<1x1x8x8xf32, #tpu.memory_space<vmem>>, vector<1x1x8x8xf32>
    %4 = vector.shape_cast %3 : vector<1x1x8x8xf32> to vector<8x8xf32>
    %c0_4 = arith.constant 0 : index
    %c0_5 = arith.constant 0 : index
    %c0_6 = arith.constant 0 : index
    %c0_7 = arith.constant 0 : index
    %5 = vector.load %arg5[%c0_4, %c0_5, %c0_6, %c0_7] : memref<1x1x8x8xf32, #tpu.memory_space<vmem>>, vector<1x1x8x8xf32>
    %6 = vector.shape_cast %5 : vector<1x1x8x8xf32> to vector<8x8xf32>
    %c0_8 = arith.constant 0 : index
    %c0_9 = arith.constant 0 : index
    %c0_10 = arith.constant 0 : index
    %c0_11 = arith.constant 0 : index
    %7 = vector.load %arg6[%c0_8, %c0_9, %c0_10, %c0_11] : memref<1x1x8x8xf32, #tpu.memory_space<vmem>>, vector<1x1x8x8xf32>
    %8 = vector.shape_cast %7 : vector<1x1x8x8xf32> to vector<8x8xf32>
    %c0_12 = arith.constant 0 : index
    %c0_13 = arith.constant 0 : index
    %c0_14 = arith.constant 0 : index
    %9 = vector.load %arg7[%c0_12, %c0_13, %c0_14] : memref<1x16x8xf32, #tpu.memory_space<vmem>>, vector<1x16x8xf32>
    %10 = vector.shape_cast %9 : vector<1x16x8xf32> to vector<16x8xf32>
    %c0_15 = arith.constant 0 : index
    %c0_16 = arith.constant 0 : index
    %c0_17 = arith.constant 0 : index
    %11 = vector.load %arg8[%c0_15, %c0_16, %c0_17] : memref<1x16x8xf32, #tpu.memory_space<vmem>>, vector<1x16x8xf32>
    %12 = vector.shape_cast %11 : vector<1x16x8xf32> to vector<16x8xf32>
    %c0_18 = arith.constant 0 : index
    %c0_19 = arith.constant 0 : index
    %c0_20 = arith.constant 0 : index
    %13 = vector.load %arg9[%c0_18, %c0_19, %c0_20] : memref<1x8x1xf32, #tpu.memory_space<vmem>>, vector<1x8x1xf32>
    %14 = vector.shape_cast %13 : vector<1x8x1xf32> to vector<8x1xf32>
    %c0_21 = arith.constant 0 : index
    %c0_22 = arith.constant 0 : index
    %c0_23 = arith.constant 0 : index
    %c0_24 = arith.constant 0 : index
    %15 = vector.load %arg10[%c0_21, %c0_22, %c0_23, %c0_24] : memref<1x1x1x8xf32, #tpu.memory_space<vmem>>, vector<1x1x1x8xf32>
    %16 = vector.shape_cast %15 : vector<1x1x1x8xf32> to vector<1x8xf32>
    %cst = arith.constant dense<0.000000e+00> : vector<8x8xf32>
    %17 = tpu.matmul %4, %6, %cst {dimension_numbers = #tpu.dot_dimension_numbers<[1], [1], [0], [0], [0, 0, 1, 0], [], []>} : vector<8x8xf32>, vector<8x8xf32>, vector<8x8xf32> -> vector<8x8xf32>
    %cst_25 = arith.constant dense<0.000000e+00> : vector<8x16xf32>
    %18 = tpu.matmul %4, %10, %cst_25 {dimension_numbers = #tpu.dot_dimension_numbers<[1], [1], [0], [0], [0, 0, 1, 0], [], []>} : vector<8x8xf32>, vector<16x8xf32>, vector<8x16xf32> -> vector<8x16xf32>
    %cst_26 = arith.constant dense<0.000000e+00> : vector<8x16xf32>
    %19 = tpu.matmul %6, %12, %cst_26 {dimension_numbers = #tpu.dot_dimension_numbers<[1], [1], [0], [0], [0, 0, 1, 0], [], []>} : vector<8x8xf32>, vector<16x8xf32>, vector<8x16xf32> -> vector<8x16xf32>
    %c8_i32 = arith.constant 8 : i32
    %20 = arith.muli %arg2, %c8_i32 : i32
    %c8_i32_27 = arith.constant 8 : i32
    %21 = arith.muli %arg3, %c8_i32_27 : i32
    %22 = arith.subi %20, %21 : i32
    %c8_i32_28 = arith.constant 8 : i32
    %23 = arith.addi %22, %c8_i32_28 : i32
    %24 = tpu.iota {dimensions = array<i32: 0>} : vector<8x8xi32>
    %25 = tpu.iota {dimensions = array<i32: 1>} : vector<8x8xi32>
    %26 = vector.broadcast %23 : i32 to vector<8x8xi32>
    %27 = arith.addi %26, %24 : vector<8x8xi32>
    %28 = arith.subi %27, %25 : vector<8x8xi32>
    %c0_i32_29 = arith.constant 0 : i32
    %c15_i32 = arith.constant 15 : i32
    %29 = vector.broadcast %c0_i32_29 : i32 to vector<8x8xi32>
    %30 = arith.maxsi %29, %28 : vector<8x8xi32>
    %31 = vector.broadcast %c15_i32 : i32 to vector<8x8xi32>
    %32 = arith.minsi %31, %30 : vector<8x8xi32>
    %33 = tpu.iota {dimensions = array<i32: 1>} : vector<8x8xi32>
    %34 = tpu.iota {dimensions = array<i32: 0>} : vector<8x8xi32>
    %35 = vector.broadcast %23 : i32 to vector<8x8xi32>
    %36 = arith.addi %35, %33 : vector<8x8xi32>
    %37 = arith.subi %36, %34 : vector<8x8xi32>
    %c0_i32_30 = arith.constant 0 : i32
    %c15_i32_31 = arith.constant 15 : i32
    %38 = vector.broadcast %c0_i32_30 : i32 to vector<8x8xi32>
    %39 = arith.maxsi %38, %37 : vector<8x8xi32>
    %40 = vector.broadcast %c15_i32_31 : i32 to vector<8x8xi32>
    %41 = arith.minsi %40, %39 : vector<8x8xi32>
    %42 = tpu.iota {dimensions = array<i32: 0>} : vector<16x1xi32>
    %43 = vector.shape_cast %32 : vector<8x8xi32> to vector<8x1x8xi32>
    %44 = vector.shape_cast %42 : vector<16x1xi32> to vector<1x16x1xi32>
    %45 = vector.broadcast %43 : vector<8x1x8xi32> to vector<8x16x8xi32>
    %46 = vector.broadcast %44 : vector<1x16x1xi32> to vector<8x16x8xi32>
    %47 = arith.cmpi eq, %45, %46 : vector<8x16x8xi32>
    %48 = arith.extui %47 : vector<8x16x8xi1> to vector<8x16x8xi32>
    %49 = arith.sitofp %48 : vector<8x16x8xi32> to vector<8x16x8xf32>
    %50 = vector.shape_cast %41 : vector<8x8xi32> to vector<8x1x8xi32>
    %51 = vector.shape_cast %42 : vector<16x1xi32> to vector<1x16x1xi32>
    %52 = vector.broadcast %50 : vector<8x1x8xi32> to vector<8x16x8xi32>
    %53 = vector.broadcast %51 : vector<1x16x1xi32> to vector<8x16x8xi32>
    %54 = arith.cmpi eq, %52, %53 : vector<8x16x8xi32>
    %55 = arith.extui %54 : vector<8x16x8xi1> to vector<8x16x8xi32>
    %56 = arith.sitofp %55 : vector<8x16x8xi32> to vector<8x16x8xf32>
    %57 = vector.shape_cast %18 : vector<8x16xf32> to vector<8x1x16xf32>
    %cst_32 = arith.constant dense<0.000000e+00> : vector<8x1x8xf32>
    %58 = tpu.matmul %57, %49, %cst_32 {dimension_numbers = #tpu.dot_dimension_numbers<[2], [1], [1], [2], [0, 0, 0, 1, 1, 2], [0], [0]>} : vector<8x1x16xf32>, vector<8x16x8xf32>, vector<8x1x8xf32> -> vector<8x1x8xf32>
    %59 = vector.shape_cast %58 : vector<8x1x8xf32> to vector<8x8xf32>
    %60 = vector.shape_cast %19 : vector<8x16xf32> to vector<8x1x16xf32>
    %cst_33 = arith.constant dense<0.000000e+00> : vector<8x1x8xf32>
    %61 = tpu.matmul %60, %56, %cst_33 {dimension_numbers = #tpu.dot_dimension_numbers<[2], [1], [1], [2], [0, 0, 0, 1, 1, 2], [0], [0]>} : vector<8x1x16xf32>, vector<8x16x8xf32>, vector<8x1x8xf32> -> vector<8x1x8xf32>
    %62 = vector.shape_cast %61 : vector<8x1x8xf32> to vector<8x8xf32>
    %63 = arith.addf %17, %59 : vector<8x8xf32>
    %64 = tpu.transpose %62, [1, 0] : vector<8x8xf32> -> vector<8x8xf32>
    %65 = arith.addf %63, %64 : vector<8x8xf32>
    %66 = vector.broadcast %14 : vector<8x1xf32> to vector<8x8xf32>
    %67 = vector.broadcast %16 : vector<1x8xf32> to vector<8x8xf32>
    %68 = arith.mulf %66, %67 : vector<8x8xf32>
    %cst_34 = arith.constant 0.000000e+00 : f32
    %69 = vector.broadcast %cst_34 : f32 to vector<8x8xf32>
    %70 = arith.cmpf ogt, %68, %69 : vector<8x8xf32>
    %cst_35 = arith.constant -1.000000e+30 : f32
    %71 = vector.broadcast %cst_35 : f32 to vector<8x8xf32>
    %72 = arith.select %70, %65, %71 : vector<8x8xi1>, vector<8x8xf32>
    %c0_36 = arith.constant 0 : index
    %c0_37 = arith.constant 0 : index
    %73 = vector.load %arg12[%c0_36, %c0_37] : memref<8x1xf32, #tpu.memory_space<vmem>>, vector<8x1xf32>
    %cst_38 = arith.constant dense<0xFF800000> : vector<8xf32>
    %74 = vector.multi_reduction <maximumf>, %72, %cst_38 [1] : vector<8x8xf32> to vector<8xf32>
    %75 = vector.shape_cast %74 : vector<8xf32> to vector<8x1xf32>
    %76 = arith.maximumf %73, %75 : vector<8x1xf32>
    %77 = arith.subf %73, %76 : vector<8x1xf32>
    %78 = math.exp %77 : vector<8x1xf32>
    %79 = vector.broadcast %76 : vector<8x1xf32> to vector<8x8xf32>
    %80 = arith.subf %72, %79 : vector<8x8xf32>
    %81 = math.exp %80 : vector<8x8xf32>
    %82 = arith.mulf %81, %68 : vector<8x8xf32>
    %c0_39 = arith.constant 0 : index
    %c0_40 = arith.constant 0 : index
    %83 = vector.load %arg13[%c0_39, %c0_40] : memref<8x1xf32, #tpu.memory_space<vmem>>, vector<8x1xf32>
    %84 = arith.mulf %78, %83 : vector<8x1xf32>
    %cst_41 = arith.constant dense<0.000000e+00> : vector<8xf32>
    %85 = vector.multi_reduction <add>, %82, %cst_41 [1] : vector<8x8xf32> to vector<8xf32>
    %86 = vector.shape_cast %85 : vector<8xf32> to vector<8x1xf32>
    %87 = arith.addf %84, %86 : vector<8x1xf32>
    %c0_42 = arith.constant 0 : index
    %c0_43 = arith.constant 0 : index
    %88 = vector.load %arg13[%c0_42, %c0_43] : memref<8x1xf32, #tpu.memory_space<vmem>>, vector<8x1xf32>
    tpu.vector_store %arg13[%c0_42, %c0_43], %87 {strides = array<i32>} : memref<8x1xf32, #tpu.memory_space<vmem>>, vector<8x1xf32>,
    %c0_44 = arith.constant 0 : index
    %c0_45 = arith.constant 0 : index
    %89 = vector.load %arg14[%c0_44, %c0_45] : memref<8x8xf32, #tpu.memory_space<vmem>>, vector<8x8xf32>
    %90 = vector.broadcast %78 : vector<8x1xf32> to vector<8x8xf32>
    %91 = arith.mulf %90, %89 : vector<8x8xf32>
    %cst_46 = arith.constant dense<0.000000e+00> : vector<8x8xf32>
    %92 = tpu.matmul %82, %8, %cst_46 {dimension_numbers = #tpu.dot_dimension_numbers<[1], [0], [0], [1], [0, 0, 1, 1], [], []>} : vector<8x8xf32>, vector<8x8xf32>, vector<8x8xf32> -> vector<8x8xf32>
    %93 = arith.addf %91, %92 : vector<8x8xf32>
    %c0_47 = arith.constant 0 : index
    %c0_48 = arith.constant 0 : index
    %94 = vector.load %arg14[%c0_47, %c0_48] : memref<8x8xf32, #tpu.memory_space<vmem>>, vector<8x8xf32>
    tpu.vector_store %arg14[%c0_47, %c0_48], %93 {strides = array<i32>} : memref<8x8xf32, #tpu.memory_space<vmem>>, vector<8x8xf32>,
    %c0_49 = arith.constant 0 : index
    %c0_50 = arith.constant 0 : index
    %95 = vector.load %arg12[%c0_49, %c0_50] : memref<8x1xf32, #tpu.memory_space<vmem>>, vector<8x1xf32>
    tpu.vector_store %arg12[%c0_49, %c0_50], %76 {strides = array<i32>} : memref<8x1xf32, #tpu.memory_space<vmem>>, vector<8x1xf32>,
    %c1_i32 = arith.constant 1 : i32
    %96 = arith.cmpi eq, %arg3, %c1_i32 : i32
    %97 = arith.extui %96 : i1 to i32
    %c0_i32_51 = arith.constant 0 : i32
    %98 = arith.cmpi ne, %97, %c0_i32_51 : i32
    scf.if %98 {
      %c0_52 = arith.constant 0 : index
      %c0_53 = arith.constant 0 : index
      %99 = vector.load %arg13[%c0_52, %c0_53] : memref<8x1xf32, #tpu.memory_space<vmem>>, vector<8x1xf32>
      %cst_54 = arith.constant 0.000000e+00 : f32
      %100 = vector.broadcast %cst_54 : f32 to vector<8x1xf32>
      %101 = arith.cmpf oeq, %99, %100 : vector<8x1xf32>
      %cst_55 = arith.constant 1.000000e+00 : f32
      %102 = vector.broadcast %cst_55 : f32 to vector<8x1xf32>
      %103 = arith.select %101, %102, %99 : vector<8x1xi1>, vector<8x1xf32>
      %c0_56 = arith.constant 0 : index
      %c0_57 = arith.constant 0 : index
      %104 = vector.load %arg14[%c0_56, %c0_57] : memref<8x8xf32, #tpu.memory_space<vmem>>, vector<8x8xf32>
      %105 = tpu.reciprocal %103 {approx = true} : vector<8x1xf32> -> vector<8x1xf32>
      %106 = vector.broadcast %105 : vector<8x1xf32> to vector<8x8xf32>
      %107 = arith.mulf %104, %106 : vector<8x8xf32>
      %c0_58 = arith.constant 0 : index
      %c0_59 = arith.constant 0 : index
      %c0_60 = arith.constant 0 : index
      %c0_61 = arith.constant 0 : index
      %108 = vector.load %arg11[%c0_58, %c0_59, %c0_60, %c0_61] : memref<1x1x8x8xf32, #tpu.memory_space<vmem>>, vector<1x1x8x8xf32>
      %109 = vector.shape_cast %108 : vector<1x1x8x8xf32> to vector<8x8xf32>
      %110 = vector.shape_cast %107 : vector<8x8xf32> to vector<1x1x8x8xf32>
      tpu.vector_store %arg11[%c0_58, %c0_59, %c0_60, %c0_61], %110 {strides = array<i32>} : memref<1x1x8x8xf32, #tpu.memory_space<vmem>>, vector<1x1x8x8xf32>,
    } else {
    }
    return
  }
  func.func @transform_0(%arg0: i32, %arg1: i32, %arg2: i32, %arg3: i32) -> (i32, i32, i32, i32) {
    %c0_i32 = arith.constant 0 : i32
    %c0_i32_0 = arith.constant 0 : i32
    return %arg0, %arg1, %arg2, %c0_i32 : i32, i32, i32, i32
  }
  func.func @transform_1(%arg0: i32, %arg1: i32, %arg2: i32, %arg3: i32) -> (i32, i32, i32, i32) {
    %c0_i32 = arith.constant 0 : i32
    %c0_i32_0 = arith.constant 0 : i32
    return %arg0, %arg1, %arg3, %c0_i32 : i32, i32, i32, i32
  }
  func.func @transform_2(%arg0: i32, %arg1: i32, %arg2: i32, %arg3: i32) -> (i32, i32, i32, i32) {
    %c0_i32 = arith.constant 0 : i32
    %c0_i32_0 = arith.constant 0 : i32
    return %arg0, %arg1, %arg3, %c0_i32 : i32, i32, i32, i32
  }
  func.func @transform_3(%arg0: i32, %arg1: i32, %arg2: i32, %arg3: i32) -> (i32, i32, i32) {
    %c0_i32 = arith.constant 0 : i32
    %c0_i32_0 = arith.constant 0 : i32
    %c0_i32_1 = arith.constant 0 : i32
    return %arg1, %c0_i32, %c0_i32_0 : i32, i32, i32
  }
  func.func @transform_4(%arg0: i32, %arg1: i32, %arg2: i32, %arg3: i32) -> (i32, i32, i32) {
    %c0_i32 = arith.constant 0 : i32
    %c0_i32_0 = arith.constant 0 : i32
    %c0_i32_1 = arith.constant 0 : i32
    return %arg1, %c0_i32, %c0_i32_0 : i32, i32, i32
  }
  func.func @transform_5(%arg0: i32, %arg1: i32, %arg2: i32, %arg3: i32) -> (i32, i32, i32) {
    %c0_i32 = arith.constant 0 : i32
    %c0_i32_0 = arith.constant 0 : i32
    return %arg0, %arg2, %c0_i32 : i32, i32, i32
  }
  func.func @transform_6(%arg0: i32, %arg1: i32, %arg2: i32, %arg3: i32) -> (i32, i32, i32, i32) {
    %c0_i32 = arith.constant 0 : i32
    %c0_i32_0 = arith.constant 0 : i32
    %c0_i32_1 = arith.constant 0 : i32
    return %arg0, %arg3, %c0_i32, %c0_i32_0 : i32, i32, i32, i32
  }
  func.func @transform_7(%arg0: i32, %arg1: i32, %arg2: i32, %arg3: i32) -> (i32, i32, i32, i32) {
    %c0_i32 = arith.constant 0 : i32
    %c0_i32_0 = arith.constant 0 : i32
    return %arg0, %arg1, %arg2, %c0_i32 : i32, i32, i32, i32
  }
}

</mosaic_0001>

<bundles_post_ra>
// kernel: deberta_attention.5
= control target key start
LH: loop header
LB: loop body
LE: loop exit
PB: predicated region body
PF: predicated region fallthrough
CT: control target
= control target key end

     0   :  { %vm27_vm0 = vcmask 261120   ;;  %vm109_vm1 = vcmask 523264   ;;  %s191_s1 = inlined_call_operand.vmem [shape: f32[32,64], index: 1, kind: input, shape index: {}]   ;;  %s192_s0 = inlined_call_operand.vmem [shape: f32[16,32], index: 0, kind: input, shape index: {}]   ;;  %s193_s2 = inlined_call_operand.vmem [shape: f32[1,64], index: 2, kind: input, shape index: {}]   ;;  %s194_s3 = inlined_call_operand.vmem [shape: f32[16,64], index: 3, kind: output, shape index: {}]  }
   0x1   :  { %v16_v0 = vld [vmem:[%s191_s1] sm:$0xff]  ;;  %v17_v1 = vld [vmem:[%s191_s1 + $0x8] sm:$0xff]  ;;  %v18_v2 = vld [vmem:[%s191_s1 + $0x10] sm:$0xff] }
   0x2   :  { %v136_v3 = vpack.c.bf16 %v17_v1, %v16_v0  ;;  %v19_v4 = vld [vmem:[%s191_s1 + $0x18] sm:$0xff]  ;;  %v14_v5 = vld [vmem:[%s192_s0] sm:$0xff]  ;;  %v15_v7 = vld [vmem:[%s192_s0 + $0x8] sm:$0xff] }
   0x3   :  { %v140_v6 = vpack.c.bf16 %v19_v4, %v18_v2  ;;  %133 = vmatprep.mubr.msk.f32.mxu0 %vm27_vm0, %v14_v5  ;;  %v116_v8 = vld [vmem:[%s193_s2] ss:$0 sm:$0xff] }
   0x4   :  { %137 = vmatprep.subr.bf16.mxu0 %v136_v3 }
   0x5   :  { %139 = vmatpush3.bf16.msra.mxu0 %v136_v3 }
   0x6   :  { %141 = vmatprep.subr.bf16.mxu0 %v140_v6 }
   0x9   :  { %143 = vmatpush3.bf16.msra.mxu0 %v140_v6 }
   0xc   :  { %134 = vmatmul.mubr.msk.f32.vlgmr.msra.gmra.mrb[0].mxu0 %vm27_vm0, %v15_v7 }
  0xdf   :  { %v135_v9 = vpop.f32.mrb[0].mxu0 }
  0xe0   :  { %v106_v10 = vadd.f32 %v135_v9, %v116_v8  ;;  %v100_v11 = vpop.f32.mrb[1].mxu0 }
  0xe1   :  { %v101_v12 = vadd.f32 %v116_v8, %v100_v11 }
  0xe2   :  { %111 = vst.msk [vmem:[%s194_s3 + $0x8] sm:$0xff] %vm109_vm1, %v106_v10 }
  0xe3   :  { %110 = vst.msk [vmem:[%s194_s3] sm:$0xff] %vm109_vm1, %v101_v12 }

// kernel: deberta_attention.4
= control target key start
LH: loop header
LB: loop body
LE: loop exit
PB: predicated region body
PF: predicated region fallthrough
CT: control target
= control target key end

     0   :  { %s403_s12 = smov 0   ;;  %s435_s0 = inlined_call_operand.vmem [shape: f32[32,32], index: 0, kind: input, shape index: {}]   ;;  %s436_s1 = inlined_call_operand.vmem [shape: f32[32,96], index: 1, kind: input, shape index: {}]   ;;  %s437_s2 = inlined_call_operand.vmem [shape: f32[1,96], index: 2, kind: input, shape index: {}]   ;;  %s438_s3 = inlined_call_operand.vmem [shape: f32[32,96], index: 3, kind: output, shape index: {}]  }
   0x1 LB: > { %s328_s13 = sadd.s32 4294967295, %s381_s12   ;;  %p332_p0 = scmp.ge.s32.totalorder %s381_s12, 1  ;;  %s381_s12 = sphi %s403_s12, %s13_s12  }
   0x2   : > { %p138_p1 = scmp.lt.s32.totalorder %s381_s12, 3 }
   0x4   : > { %p139_p2 = pnand %p332_p0, %p138_p1 }
   0x5   : > { %v176_v0 = vld [vmem:[%s436_s1] sm:$0xff] (!%p139_p2)  ;;  %v177_v1 = vld [vmem:[%s436_s1 + $0x8] sm:$0xff] (!%p139_p2)  ;;  %v178_v2 = vld [vmem:[%s436_s1 + $0x10] sm:$0xff] (!%p139_p2)  ;;  %s333_s20 = sshll.u32 (!%p139_p2), %s328_s13, 1  ;;  %vm187_vm0 = vcmask (!%p139_p2), 261120   ;;  %vm269_vm1 = vcmask (!%p139_p2), 785408  }
   0x6   : > { %142 = sbr.rel (%p139_p2) target bundleno = 234 (0xea), region = 32  ;;  %v359_v3 = vpack.c.bf16 (!%p139_p2), %v177_v1, %v176_v0  ;;  %v179_v4 = vld [vmem:[%s436_s1 + $0x18] sm:$0xff] (!%p139_p2)  ;;  %p163_p3 = scmp.lt.s32.totalorder (!%p139_p2), %s333_s20, 3  ;;  %v337_v8 = vld [vmem:[%s437_s2] ss:$0 sm:$0xff] (!%p139_p2) }
   0x7   : > { %v363_v5 = vpack.c.bf16 (!%p139_p2), %v179_v4, %v178_v2 }
   0x8   : > { %360 = vmatprep.subr.bf16.mxu0 (!%p139_p2), %v359_v3 }
   0x9   : > { %362 = vmatpush3.bf16.msra.mxu0 (!%p139_p2), %v359_v3 }
   0xa   : > { %364 = vmatprep.subr.bf16.mxu0 (!%p139_p2), %v363_v5 }
   0xd   : > { %s440_s20 = smov (!%p163_p3, %s333_s20), 3  ;;  %366 = vmatpush3.bf16.msra.mxu0 %v363_v5 }
   0xe   : > { %s334_s23 = sshll.u32 %s440_s20, 3 }
   0xf   : > { %s166_s26 = scalar_lea.vmem %s435_s0, %s334_s23  ;;  %s172_s4 = scalar_lea.vmem %s438_s3, %s334_s23 }
  0x10   : > { %v174_v6 = vld [vmem:[%s166_s26] sm:$0xff]  ;;  %v175_v7 = vld [vmem:[%s166_s26 + $0x8] sm:$0xff] }
  0x11   : > { %356 = vmatprep.mubr.msk.f32.mxu0 %vm187_vm0, %v174_v6 }
  0x12   : > { %357 = vmatmul.mubr.msk.f32.vlgmr.msra.gmra.mrb[0].mxu0 %vm187_vm0, %v175_v7 }
  0xe5   : > { %v358_v9 = vpop.f32.mrb[0].mxu0 }
  0xe6   : > { %v260_v10 = vpop.f32.mrb[1].mxu0  ;;  %v266_v12 = vadd.f32 %v358_v9, %v337_v8 }
  0xe7   : > { %v261_v11 = vadd.f32 %v337_v8, %v260_v10 }
  0xe8   : > { %271 = vst.msk [vmem:[%s172_s4 + $0x8] sm:$0xff] %vm269_vm1, %v266_v12 }
  0xe9   : > { %270 = vst.msk [vmem:[%s172_s4] sm:$0xff] %vm269_vm1, %v261_v11 }
  0xea PF: > { %s13_s12 = sadd.s32 1, %s381_s12  }
  0xeb   : > { %p10_p4 = scmp.ge.s32.totalorder %s13_s12, 4  }
  0xed   :  { %12 = sbr.rel (!%p10_p4) target bundleno = 1 (0x1), region = 62 }

// kernel: deberta_attention.7
= control target key start
LH: loop header
LB: loop body
LE: loop exit
PB: predicated region body
PF: predicated region fallthrough
CT: control target
= control target key end

     0   :  { %11 = vsyncpa [#allocation3], 0  ;;  %s835_s0 = inlined_call_operand.vmem [shape: f32[32,32], index: 0, kind: input, shape index: {}]   ;;  %s836_s1 = inlined_call_operand.vmem [shape: f32[32,32], index: 1, kind: input, shape index: {}]   ;;  %s837_s2 = inlined_call_operand.vmem [shape: f32[32,32], index: 2, kind: input, shape index: {}]   ;;  %s838_s3 = inlined_call_operand.vmem [shape: f32[1,32], index: 3, kind: input, shape index: {}]   ;;  %s839_s4 = inlined_call_operand.vmem [shape: f32[1,32], index: 4, kind: input, shape index: {}]   ;;  %s840_s5 = inlined_call_operand.vmem [shape: f32[1,32], index: 5, kind: input, shape index: {}]   ;;  %s841_s6 = inlined_call_operand.hbm [shape: f32[32,32], index: 6, kind: output, shape index: {}]  }
   0x1   :  { %13 = vsyncpa [#allocation3 + $0x1], 0  ;;  %s701_s21 = smov 0   ;;  %s703_s22 = smov 0  }
   0x2   :  { %s705_s23 = smov 0   ;;  %s707_s24 = smov 0  }
   0x3 LB: > { %s722_s25 = sadd.s32 4294967295, %s661_s24   ;;  %s509_s26 = sadd.s32 4294967294, %s661_s24   ;;  %s661_s24 = sphi %s707_s24, %s847_s24   ;;  %s657_s23 = sphi %s705_s23, %s846_s23   ;;  %s653_s22 = sphi %s703_s22, %s845_s22   ;;  %s649_s21 = sphi %s701_s21, %s844_s21  }
   0x4   : > { %s726_s27 = sadd.s32 1, %s661_s24   ;;  %s162_s28 = sadd.s32 1, %s657_s23 }
   0x5   : > { %s159_s29 = ssub.s32 %s661_s24, %s726_s27  ;;  %p172_p0 = scmp.ne.s32.totalorder %s657_s23, %s653_s22 }
   0x6   : > { %p160_p1 = scmp.eq.s32.totalorder %s159_s29, 0  ;;  %p173_p2 = scmp.eq.s32.totalorder %s722_s25, 1 }
   0x7   : > { %p178_p3 = scmp.ne.s32.totalorder %s653_s22, %s649_s21  ;;  %p179_p4 = scmp.eq.s32.totalorder %s509_s26, 1 }
   0x8   : > { %s737_s30 = scalar_select %p160_p1, %s657_s23, %s162_s28  }
   0x9   : > { %p739_p5 = por %p173_p2, %p172_p0  ;;  %p743_p6 = por %p179_p4, %p178_p3 }
   0xa   : > { %p512_p7 = scmp.ge.s32.totalorder %s661_s24, 1  ;;  %p227_p8 = scmp.lt.s32.totalorder %s661_s24, 3 }
   0xc   : > { %p228_p9 = pnand %p512_p7, %p227_p8 }
   0xd   : > { %v277_v0 = vld [vmem:[%s837_s2] sm:$0xff] (!%p228_p9)  ;;  %v278_v1 = vld [vmem:[%s837_s2 + $0x8] sm:$0xff] (!%p228_p9)  ;;  %v279_v2 = vld [vmem:[%s837_s2 + $0x10] sm:$0xff] (!%p228_p9)  ;;  %s514_s15 = sshll.u32 (!%p228_p9), %s722_s25, 1  ;;  %vm288_vm0 = vcmask (!%p228_p9), 261120   ;;  %s259_s12 = sand.u32 (!%p228_p9), 1, %s653_s22  }
   0xe   : > { %231 = sbr.rel (%p228_p9) target bundleno = 575 (0x23f), region = 44  ;;  %v546_v3 = vpack.c.bf16 (!%p228_p9), %v278_v1, %v277_v0  ;;  %v280_v4 = vld [vmem:[%s837_s2 + $0x18] sm:$0xff] (!%p228_p9)  ;;  %p263_p10 = scmp.lt.s32.totalorder (!%p228_p9), %s514_s15, 3  ;;  %v518_v8 = vld [vmem:[%s838_s3] ss:$0 sm:$0xff] (!%p228_p9) }
   0xf   : > { %v550_v5 = vpack.c.bf16 (!%p228_p9), %v280_v4, %v279_v2  ;;  %v521_v36 = vld [vmem:[%s839_s4] ss:$0 sm:$0xff] (!%p228_p9)  ;;  %s663_s10 = smov (!%p228_p9), [#allocation2]  }
  0x10   : > { %547 = vmatprep.subr.bf16.mxu0 (!%p228_p9), %v546_v3  ;;  %v522_v38 = vld [vmem:[%s840_s5] ss:$0 sm:$0xff] (!%p228_p9)  ;;  %s603_s11 = sshll.u32 (!%p228_p9), %s663_s10, 4  ;;  %s604_s11 = int_to_ptr.vmem [resolvable:$false] %s603_s11 }
  0x11   : > { %549 = vmatpush3.bf16.msra.mxu0 (!%p228_p9), %v546_v3  ;;  %s605_s13 = scalar_lea.vmem (!%p228_p9), %s604_s11, 512 }
  0x12   : > { %551 = vmatprep.subr.bf16.mxu0 (!%p228_p9), %v550_v5 }
  0x15   : > { %s849_s15 = smov (!%p263_p10, %s514_s15), 3  ;;  %553 = vmatpush3.bf16.msra.mxu0 %v550_v5 }
  0x16   : > { %s515_s18 = sshll.u32 %s849_s15, 3  ;;  %s513_s15 = sshll.u32 %s259_s12, 4 }
  0x17   : > { %s266_s26 = scalar_lea.vmem %s835_s0, %s515_s18  ;;  %s272_s9 = scalar_lea.vmem %s836_s1, %s515_s18 }
  0x18   : > { %v275_v6 = vld [vmem:[%s266_s26] sm:$0xff]  ;;  %v276_v7 = vld [vmem:[%s266_s26 + $0x8] sm:$0xff]  ;;  %s528_s18 = sshll.u32 %s722_s25, 8  ;;  %s261_s19 = scalar_lea.vmem [#allocation2], %s513_s15 }
  0x19   : > { %543 = vmatprep.mubr.msk.f32.mxu0 %vm288_vm0, %v275_v6  ;;  %v371_v10 = vld [vmem:[%s272_s9 + $0x8] sm:$0xff]  ;;  %v370_v13 = vld [vmem:[%s272_s9] sm:$0xff]  ;;  %s435_s20 = sshll.u32 %s261_s19, 4  ;;  %s789_s29 = scalar_lea.hbm %s841_s6, %s528_s18  ;;  %s791_s20 = int_to_ptr.vmem [resolvable:$true] %s435_s20 }
  0x1a   : > { %544 = vmatmul.mubr.msk.f32.vlgmr.msra.gmra.mrb[0].mxu0 %vm288_vm0, %v276_v7  ;;  %s794_s9 = scalar_lea.sflag [#allocation3], %s259_s12  ;;  %s599_s25 = scalar_lea.vmem %s791_s20, 256 }
  0x1b   : > { %p600_p11 = scmp.ne.s32.totalorder %s791_s20, %s599_s25  ;;  %p606_p0 = scmp.lt.s32.totalorder %s791_s20, %s604_s11 }
  0x1c   : > { %p607_p1 = scmp.lt.s32.totalorder %s605_s13, %s599_s25 }
  0x1d   : > { %p601_p12 = pnand %p600_p11, %p739_p5 }
  0x1e   : > { %p608_p2 = por %p607_p1, %p606_p0 }
  0x1f   : > { %p602_p13 = pneg %p601_p12 }
  0x21   : > { %p609_p3 = pnand %p608_p2, %p602_p13 }
  0xed   : > { %v545_v9 = vpop.f32.mrb[0].mxu0 }
  0xee   : > { %v367_v11 = vadd.f32 %v545_v9, %v518_v8  ;;  %v361_v12 = vpop.f32.mrb[1].mxu0 }
  0xef   : > { %v362_v14 = vadd.f32 %v518_v8, %v361_v12 }
  0xf0   : > { %v373_v15 = vadd.f32 %v371_v10, %v367_v11 }
  0xf1   : > { %v372_v16 = vadd.f32 %v370_v13, %v362_v14 }
  0xf2   : > { %v377_v18 = vsel %vm288_vm0, %v373_v15, 0.0 }
  0xf3   : > { %v374_v17 = vsel %vm288_vm0, %v372_v16, 0.0 }
  0xf4   : > { %375 = vadd.xlane.f32.xlu0 %v374_v17 }
  0xf8   : > { %378 = vadd.xlane.f32.xlu0 %v377_v18 }
 0x181   : > { %v376_v19 = vpop.xlane.xlu0 %375 }
 0x182   : > { %v381_v20 = vmul.f32 0.03125, %v376_v19 }
 0x184   : > { %v383_v21 = vsub.f32 %v372_v16, %v381_v20 }
 0x185   : > { %v379_v22 = vpop.xlane.xlu0 %378 }
 0x186   : > { %v382_v23 = vmul.f32 0.03125, %v379_v22  ;;  %v385_v24 = vmul.f32 %v383_v21, %v383_v21 }
 0x188   : > { %v384_v25 = vsub.f32 %v373_v15, %v382_v23  ;;  %v387_v26 = vsel %vm288_vm0, %v385_v24, 0.0 }
 0x189   : > { %388 = vadd.xlane.f32.xlu1 %v387_v26 }
 0x18a   : > { %v386_v27 = vmul.f32 %v384_v25, %v384_v25 }
 0x18c   : > { %v390_v28 = vsel %vm288_vm0, %v386_v27, 0.0 }
 0x18d   : > { %391 = vadd.xlane.f32.xlu1 %v390_v28 }
 0x216   : > { %v389_v29 = vpop.xlane.xlu1 %388 }
 0x217   : > { %v393_v30 = vmul.f32 0.03125, %v389_v29 }
 0x219   : > { %v395_v31 = vadd.f32 1e-12, %v393_v30 }
 0x21a   : > { %v392_v32 = vpop.xlane.xlu1 %391 }
 0x21b   : > { %595 = vrsqrt.f32 %v395_v31  ;;  %v394_v33 = vmul.f32 0.03125, %v392_v32 }
 0x21d   : > { %v396_v34 = vadd.f32 1e-12, %v394_v33 }
 0x21f   : > { %597 = vrsqrt.f32 %v396_v34 }
 0x225   : > { %v596_v35 = vpop.eup %595 }
 0x226   : > { %v399_v37 = vmul.f32 %v596_v35, %v383_v21 }
 0x228   : > { %v408_v39 = vmul.f32 %v521_v36, %v399_v37 }
 0x229   : > { %v598_v40 = vpop.eup %597 }
 0x22a   : > { %v400_v41 = vmul.f32 %v598_v40, %v384_v25  ;;  %v417_v42 = vadd.f32 %v522_v38, %v408_v39 }
 0x22c   : > { %v409_v43 = vmul.f32 %v521_v36, %v400_v41  ;;  %419 = vst.msk [vmem:[%s261_s19] sm:$0xff] %vm288_vm0, %v417_v42 }
 0x22e   : > { %v418_v44 = vadd.f32 %v522_v38, %v409_v43 }
 0x230   : > { %420 = vst.msk [vmem:[%s261_s19 + $0x8] sm:$0xff] %vm288_vm0, %v418_v44 }
 0x231   : > { %612 = shalt.err (!%p609_p3)
}
 0x232   : > { %s613_s12 = scalar_lea.hbm %s789_s29, 256  ;;  %s617_s16 = scalar_lea.hbm %s841_s6, 512 }
 0x233   : > { %p614_p4 = scmp.ne.s32.totalorder %s789_s29, %s613_s12  ;;  %p618_p9 = scmp.lt.u32.totalorder %s789_s29, %s841_s6 }
 0x234   : > { %p619_p10 = scmp.lt.u32.totalorder %s617_s16, %s613_s12  ;;  %p621_p12 = scmp.lt.u32.totalorder %s613_s12, %s789_s29 }
 0x235   : > { %p615_p7 = pnand %p614_p4, %p739_p5 }
 0x236   : > { %p620_p11 = por %p619_p10, %p618_p9 }
 0x237   : > { %p616_p8 = pneg %p615_p7 }
 0x238   : > { %p622_p13 = por %p621_p12, %p620_p11 }
 0x23a   : > { %p623_p0 = pnand %p622_p13, %p616_p8 }
 0x23c   : > { %626 = shalt.err (!%p623_p0)
}
 0x23d   : > { %s664_s19 = smov 128   ;;  %s665_s26 = smov 8  }
 0x23e   : > { %554 = dma.vmem_to_hbm [thread:$0]  (%p739_p5), %s791_s20, 256, %s789_s29, %s794_s9, %s664_s19, %s664_s19, %s665_s26  }
 0x23f PF: > { %p560_p1 = scmp.ge.s32.totalorder %s661_s24, 2  ;;  %s450_s28 = sand.u32 1, %s649_s21  }
 0x240   : > { %s451_s25 = scalar_lea.sflag [#allocation3], %s450_s28 }
 0x241   : > { %p557_p2 = pnand %p560_p1, %p743_p6 }
 0x243   : > { %644 = dma.done.wait (!%p557_p2), %s451_s25, 256  }
 0x244   : > { %646 = vsyncadd (!%p557_p2), %s451_s25, 4294967040  ;;  %p16_p3 = scmp.ge.s32.totalorder %s726_s27, 4   ;;  %s844_s21 = smov %s653_s22 }
 0x245   : > { %s845_s22 = smov %s657_s23  ;;  %s846_s23 = smov %s737_s30 }
 0x246   : > { %s847_s24 = smov %s726_s27  ;;  %18 = sbr.rel (!%p16_p3) target bundleno = 3 (0x3), region = 82 }
 0x24d   :  { %456 = vsyncpa [#allocation3], 1 }
 0x24e   :  { %458 = vsyncpa [#allocation3 + $0x1], 1 }

// kernel: deberta_attention.6
= control target key start
LH: loop header
LB: loop body
LE: loop exit
PB: predicated region body
PF: predicated region fallthrough
CT: control target
= control target key end

     0   :  { %s3349_s24 = smov 0   ;;  %s3351_s25 = smov 0   ;;  %s3795_s0 = inlined_call_operand.vmem [shape: f32[2,4,16,8], index: 0, kind: input, shape index: {}]   ;;  %s3796_s1 = inlined_call_operand.vmem [shape: f32[2,4,16,8], index: 1, kind: input, shape index: {}]   ;;  %s3797_s2 = inlined_call_operand.vmem [shape: f32[2,4,16,8], index: 2, kind: input, shape index: {}]   ;;  %s3798_s3 = inlined_call_operand.vmem [shape: f32[4,16,8], index: 3, kind: input, shape index: {}]   ;;  %s3799_s4 = inlined_call_operand.vmem [shape: f32[4,16,8], index: 4, kind: input, shape index: {}]   ;;  %s3800_s5 = inlined_call_operand.vmem [shape: f32[2,16,1], index: 5, kind: input, shape index: {}]   ;;  %s3801_s6 = inlined_call_operand.vmem [shape: f32[2,2,1,8], index: 6, kind: input, shape index: {}]   ;;  %s3802_s7 = inlined_call_operand.vmem [shape: f32[2,4,16,8], index: 7, kind: output, shape index: {}]  }
   0x1   :  { %3811 = sst [smem:[#allocation14_spill]] %s3795_s0  ;;  %s3353_s26 = smov 0  }
   0x2   :  { %3812 = sst [smem:[#allocation15_spill]] %s3798_s3  ;;  %s3355_s27 = smov 0  }
   0x3   :  { %s3357_s28 = smov 0   ;;  %s3359_s29 = smov 0  }
   0x4   :  { %s3361_s30 = smov 0   ;;  %s3363_s8 = smov 0  }
   0x5   :  { %s3365_s9 = smov 0  }
   0x6 LB: > { %3813 = sst [smem:[#allocation5_spill]] %s3282_s28  ;;  %s32_s10 = sadd.s32 1, %s3282_s28  ;;  %s3298_s9 = sphi %s3365_s9, %s17_s9   ;;  %s3294_s8 = sphi %s3363_s8, %s3872_s8   ;;  %s3290_s30 = sphi %s3361_s30, %s3871_s30   ;;  %s3286_s29 = sphi %s3359_s29, %s3870_s29   ;;  %s3282_s28 = sphi %s3357_s28, %s3869_s28   ;;  %s3278_s27 = sphi %s3355_s27, %s3868_s27   ;;  %s3274_s26 = sphi %s3353_s26, %s3867_s26   ;;  %s3270_s25 = sphi %s3351_s25, %s3866_s25   ;;  %s3266_s24 = sphi %s3349_s24, %s3865_s24  }
   0x7   : > { %3814 = sst [smem:[#allocation6_spill]] %s3286_s29  ;;  %p33_p0 = scmp.ge.s32.totalorder %s32_s10, 2 }
   0x8   : > { %3815 = sst [smem:[#allocation7_spill]] %s3290_s30  ;;  %s35_s11 = sadd.s32 1, %s3286_s29 }
   0x9   : > { %3816 = sst [smem:[#allocation8_spill]] %s3294_s8  ;;  %p2770_p1 = scmp.ge.s32.totalorder %s3298_s9, 1 }
   0xa   : > { %3817 = sst [smem:[#allocation9_spill]] %s3298_s9  ;;  %s3874_s10 = smov (%p33_p0, %s32_s10), 0 }
   0xb   : > { %3818 = sst [smem:[#allocation10_spill]] %s3874_s10  ;;  %s3876_s11 = smov (!%p33_p0, %s35_s11), %s3286_s29 }
   0xc   : > { %p369_p2 = scmp.lt.s32.totalorder %s3298_s9, 33  ;;  %p37_p3 = scmp.ge.s32.totalorder %s3876_s11, 2 }
   0xd   : > { %s39_s12 = sadd.s32 1, %s3290_s30  ;;  %s43_s13 = sadd.s32 1, %s3294_s8 }
   0xe   : > { %p370_p4 = pnand %p2770_p1, %p369_p2  ;;  %s3878_s11 = smov (%p37_p3, %s3876_s11), 0 }
   0xf   : > { %3819 = sst [smem:[#allocation11_spill]] %s3878_s11  ;;  %s3880_s12 = smov (!%p37_p3, %s39_s12), %s3290_s30 }
  0x10   : > { %p41_p5 = scmp.ge.s32.totalorder %s3880_s12, 4  ;;  %373 = sbr.rel (%p370_p4) target bundleno = 1235 (0x4d3), region = 48 }
  0x11   : > { %p464_p7 = scmp.lt.s32.totalorder (!%p370_p4), %s3278_s27, 1  ;;  %p466_p8 = scmp.lt.s32.totalorder (!%p370_p4), %s3274_s26, 3 }
  0x12   : > { %s3882_s12 = smov (%p41_p5, %s3880_s12), 0  ;;  %s3884_s13 = smov (!%p41_p5, %s43_s13), %s3294_s8 }
  0x13   : > { %3820 = sst [smem:[#allocation12_spill]] %s3882_s12  ;;  %p45_p6 = scmp.ge.s32.totalorder %s3884_s13, 2 }
  0x14   : > { %p468_p9 = scmp.lt.s32.totalorder (!%p370_p4), %s3270_s25, 1  ;;  %p480_p10 = scmp.lt.s32.totalorder (!%p370_p4), %s3266_s24, 1 }
  0x15   : > { %s3886_s13 = smov (%p45_p6, %s3884_s13), 0  ;;  %s3822_s3 = sld [smem:[#allocation15_spill]] (!%p370_p4) }
  0x16   : > { %3821 = sst [smem:[#allocation13_spill]] %s3886_s13  ;;  %s3823_s0 = sld [smem:[#allocation14_spill]] (!%p370_p4) }
  0x17   : > { %s3888_s27 = smov (!%p464_p7, %s3278_s27), 1  ;;  %s3890_s26 = smov (!%p466_p8, %s3274_s26), 3 }
  0x18   : > { %s469_s14 = scalar_select %p468_p9, %s3270_s25, 1 }
  0x19   : > { %s2771_s15 = sshll.u32 %s3890_s26, 1  ;;  %s2772_s16 = sshll.u32 %s3888_s27, 3 }
  0x1a   : > { %s471_s17 = sadd.s32 %s2771_s15, %s469_s14  ;;  %s2886_s18 = sshll.u32 %s3890_s26, 4 }
  0x1b   : > { %s473_s19 = sadd.s32 %s2772_s16, %s471_s17  ;;  %s504_s22 = scalar_lea.vmem %s3822_s3, %s2886_s18 }
  0x1c   : > { %s2773_s23 = sshll.u32 %s473_s19, 3  ;;  %s3420_s11 = scalar_lea.vmem %s3799_s4, %s2886_s18 }
  0x1d   : > { %s3425_s30 = scalar_lea.vmem %s3823_s0, %s2773_s23  ;;  %s2784_s29 = sshll.u32 %s3888_s27, 1 }
  0x1e   : > { %s481_s28 = scalar_select %p480_p10, %s3266_s24, 1 }
  0x1f   : > { %s515_s26 = sadd.s32 %s2784_s29, %s469_s14  ;;  %s3433_s20 = scalar_lea.vmem %s3802_s7, %s2773_s23 }
  0x20   : > { %s483_s19 = sadd.s32 %s2771_s15, %s481_s28  ;;  %s2785_s21 = sshll.u32 %s515_s26, 3 }
  0x21   : > { %s485_s3 = sadd.s32 %s2772_s16, %s483_s19  ;;  %s3438_s18 = scalar_lea.vmem %s3800_s5, %s2785_s21 }
  0x22   : > { %s2776_s8 = sshll.u32 %s485_s3, 3  ;;  %s3440_s10 = sadd.s32 %s2784_s29, %s481_s28 }
  0x23   : > { %s3445_s14 = scalar_lea.vmem %s3796_s1, %s2776_s8  ;;  %s3450_s15 = scalar_lea.vmem %s3797_s2, %s2776_s8 }
  0x24   : > { %s524_s17 = scalar_lea.vmem %s3801_s6, %s3440_s10  ;;  %p2790_p11 = scmp.ne.s32.totalorder %s3266_s24, 0 }
  0x25   : > { %vm541_vm0 = vcmask (!%p2790_p11), 7168   ;;  %vm544_vm1 = vcmask (!%p2790_p11), 64512   ;;  %v3300_v0 = vmov (!%p2790_p11), -1e+30   ;;  %v3301_v1 = vmov (!%p2790_p11), 0.0  }
  0x26   : > { %540 = sbr.rel (%p2790_p11) target bundleno = 45 (0x2d), region = 52  ;;  %542 = vst.msk [vmem:[#allocation2] sm:$0xff] (!%p2790_p11), %vm541_vm0, %v3300_v0  ;;  %543 = vst.msk [vmem:[#allocation3] sm:$0xff] (!%p2790_p11), %vm541_vm0, %v3301_v1 }
  0x27   : > { %545 = vst.msk [vmem:[#allocation4] sm:$0xff] (!%p2790_p11), %vm544_vm1, %v3301_v1 }
  0x2d PF: > { %v549_v2 = vld [vmem:[%s504_s22] sm:$0xff]  ;;  %v550_v3 = vld [vmem:[%s504_s22 + $0x8] sm:$0xff]  ;;  %vm3808_vm2 = vcmask 64512   ;;  %v3302_v4 = vmov 0.0|0.0   ;;  %vm3809_vm4 = vmmov 0   ;;  %v3304_v6 = vmov 0.0  }
  0x2e   : > { %3082 = vmatprep.subr.bf16.mxu0 %v3302_v4  ;;  %v3083_v5 = vpack.c.bf16 %v550_v3, %v549_v2  ;;  %vm3084_vm3 = vmpackc.low %vm3808_vm2, %vm3808_vm2  ;;  %2950 = vmatprep.mubr.msk.f32.mxu0 %vm3809_vm4, %v3304_v6  ;;  %v551_v7 = vld [vmem:[%s3420_s11] sm:$0xff]  ;;  %v552_v8 = vld [vmem:[%s3420_s11 + $0x8] sm:$0xff]  ;;  %v718_v12 = vlaneseq  ;;  %s2797_s0 = sshll.u32 %s3270_s25, 3  ;;  %s2798_s3 = sshll.u32 %s3266_s24, 3  ;;  %v3305_v17 = vmov 1966171168  }
  0x2f   : > { %3086 = vmatprep.subr.bf16.mxu1 %v3302_v4  ;;  %2957 = vmatprep.mubr.msk.f32.mxu1 %vm3809_vm4, %v3304_v6  ;;  %v3087_v9 = vpack.c.bf16 %v552_v8, %v551_v7  ;;  %v3470_v10 = vld [vmem:[%s3425_s30] sm:$0xff]  ;;  %s716_s28 = ssub.s32 %s2797_s0, %s2798_s3  ;;  %v738_v18 = vunpack.c.l.s4 %v3305_v17  ;;  %v3306_v34 = vmov 1.0|1.0   ;;  %v3838_v8 = vmov 0  ;;  %p2883_p12 = scmp.ne.s32.totalorder %s3266_s24, 1 }
  0x30   : > { %3085 = vmatpush3.bf16.xpose.msk.msra.mxu0 %vm3084_vm3, %v3083_v5  ;;  %v3473_v11 = vld [vmem:[%s3445_s14] sm:$0xff]  ;;  %v3485_v13 = vshrl.u32 %v718_v12, 7  ;;  %s717_s29 = sadd.s32 8, %s716_s28  ;;  %v721_v15 = vand.u32 127, %v718_v12  ;;  %v3840_v12 = vmov 0 }
  0x31   : > { %3090 = vmatprep.subr.bf16.mxu0 %v3302_v4  ;;  %3089 = vmatpush3.bf16.xpose.msk.msra.mxu1 %vm3084_vm3, %v3087_v9  ;;  %v722_v14 = vstv %s717_s29  ;;  %v739_v20 = vunpack.c.0.s8 %v738_v18  ;;  %v3842_v18 = vmov 0 }
  0x32   : > { %3093 = vmatprep.subr.bf16.mxu1 %v3302_v4  ;;  %v723_v16 = vadd.s32 %v722_v14, %v3485_v13  ;;  %v3494_v26 = vsub.s32 0, %v3485_v13  ;;  %v3497_v28 = vadd.s32 8, %v3485_v13  ;;  %v729_v37 = vadd.s32 %v722_v14, %v721_v15 }
  0x33   : > { %v3489_v22 = vsub.s32 %v739_v20, %v3485_v13  ;;  %v3844_v20 = vmov 0 }
  0x34   : > { %v724_v19 = vsub.s32 %v723_v16, %v721_v15  ;;  %v730_v41 = vsub.s32 %v729_v37, %v3485_v13 }
  0x36   : > { %vm725_vm5 = vcmp.gt.s32.totalorder %v724_v19, 0  ;;  %vm731_vm0 = vcmp.gt.s32.totalorder %v730_v41, 0 }
  0x37   : > { %2951 = vmatmul.mubr.msk.f32.vlgmr.msra.gmra.mrb[0].mxu0 %vm3808_vm2, %v3470_v10  ;;  %v726_v21 = vsel %vm725_vm5, %v724_v19, 0  ;;  %v732_v46 = vsel %vm731_vm0, %v730_v41, 0 }
  0x38   : > { %2964 = vmatprep.mubr.msk.f32.mxu0 %vm3809_vm4, %v3304_v6  ;;  %2958 = vmatmul.mubr.msk.f32.vlgmr.msra.gmra.mrb[0].mxu1 %vm3808_vm2, %v3473_v11  ;;  %vm727_vm6 = vcmp.lt.s32.totalorder %v726_v21, 15 }
  0x39   : > { %2971 = vmatprep.mubr.msk.f32.mxu1 %vm3809_vm4, %v3304_v6  ;;  %v728_v23 = vsel %vm727_vm6, %v726_v21, 15 }
  0x3a   : > { %v743_v24 = vrot.slane %v728_v23, %v3489_v22  ;;  %v736_v33 = vcombine.high %v728_v23, %v728_v23 }
  0x3c   : > { %v759_v25 = vrot.slane %v743_v24, %v3489_v22  ;;  %v751_v27 = vcombine.high %v743_v24, %v743_v24  ;;  %v750_v36 = vrot.slane %v736_v33, %v3489_v22 }
  0x3e   : > { %v788_v29 = vrot.slane %v759_v25, %v3494_v26  ;;  %v773_v30 = vrot.slane %v751_v27, %v3489_v22  ;;  %v781_v31 = vcombine.high %v759_v25, %v759_v25  ;;  %v766_v40 = vrot.slane %v750_v36, %v3489_v22 }
  0x3f   : > { %v752_v43 = vcombine.high %v750_v36, %v750_v36 }
  0x40   : > { %vm817_vm7 = vcmp.eq.s32.totalorder %v788_v29, %v3485_v13  ;;  %vm818_vm8 = vcmp.eq.s32.totalorder %v788_v29, %v3497_v28  ;;  %v792_v32 = vrot.slane %v773_v30, %v3494_v26  ;;  %v796_v35 = vrot.slane %v781_v31, %v3494_v26 }
  0x41   : > { %vm3091_vm9 = vmpackc.low %vm818_vm8, %vm817_vm7  ;;  %v783_v38 = vcombine.high %v773_v30, %v773_v30  ;;  %v804_v44 = vrot.slane %v766_v40, %v3494_v26  ;;  %v780_v45 = vrot.slane %v752_v43, %v3489_v22  ;;  %v782_v48 = vcombine.high %v766_v40, %v766_v40 }
  0x42   : > { %3092 = vmatpush3.bf16.msk.msra.mxu0 %vm3091_vm9, %v3306_v34  ;;  %vm819_vm10 = vcmp.eq.s32.totalorder %v792_v32, %v3485_v13  ;;  %vm820_vm11 = vcmp.eq.s32.totalorder %v792_v32, %v3497_v28  ;;  %vm821_vm13 = vcmp.eq.s32.totalorder %v796_v35, %v3485_v13  ;;  %vm822_vm14 = vcmp.eq.s32.totalorder %v796_v35, %v3497_v28 }
  0x43   : > { %3096 = vmatprep.subr.bf16.mxu0 %v3302_v4  ;;  %vm3094_vm12 = vmpackc.low %vm820_vm11, %vm819_vm10  ;;  %v800_v42 = vrot.slane %v783_v38, %v3494_v26  ;;  %vm825_vm6 = vcmp.eq.s32.totalorder %v804_v44, %v3485_v13  ;;  %vm826_vm7 = vcmp.eq.s32.totalorder %v804_v44, %v3497_v28  ;;  %vm733_vm8 = vcmp.lt.s32.totalorder %v732_v46, 15 }
  0x44   : > { %3095 = vmatpush3.bf16.msk.msra.mxu1 %vm3094_vm12, %v3306_v34  ;;  %vm3513_vm15 = vmpackc.low %vm822_vm14, %vm821_vm13  ;;  %v808_v50 = vrot.slane %v780_v45, %v3494_v26  ;;  %v734_v51 = vsel %vm733_vm8, %v732_v46, 15  ;;  %v812_v52 = vrot.slane %v782_v48, %v3494_v26  ;;  %v784_v54 = vcombine.high %v780_v45, %v780_v45 }
  0x45   : > { %3099 = vmatprep.subr.bf16.mxu1 %v3302_v4  ;;  %vm823_vm1 = vcmp.eq.s32.totalorder %v800_v42, %v3485_v13  ;;  %vm824_vm3 = vcmp.eq.s32.totalorder %v800_v42, %v3497_v28  ;;  %vm3531_vm9 = vmpackc.low %vm826_vm7, %vm825_vm6  ;;  %v872_v53 = vrot.slane %v734_v51, %v3489_v22  ;;  %v865_v0 = vcombine.high %v734_v51, %v734_v51 }
  0x46   : > { %vm3525_vm5 = vmpackc.low %vm824_vm3, %vm823_vm1  ;;  %vm827_vm10 = vcmp.eq.s32.totalorder %v808_v50, %v3485_v13  ;;  %vm828_vm11 = vcmp.eq.s32.totalorder %v808_v50, %v3497_v28  ;;  %vm829_vm13 = vcmp.eq.s32.totalorder %v812_v52, %v3485_v13  ;;  %vm830_vm14 = vcmp.eq.s32.totalorder %v812_v52, %v3497_v28 }
  0x47   : > { %vm3540_vm12 = vmpackc.low %vm828_vm11, %vm827_vm10  ;;  %v888_v56 = vrot.slane %v872_v53, %v3489_v22  ;;  %v816_v58 = vrot.slane %v784_v54, %v3494_v26  ;;  %v880_v59 = vcombine.high %v872_v53, %v872_v53  ;;  %v879_v5 = vrot.slane %v865_v0, %v3489_v22 }
  0x48   : > { %vm3547_vm0 = vmpackc.low %vm830_vm14, %vm829_vm13 }
  0x49   : > { %v917_v60 = vrot.slane %v888_v56, %v3494_v26  ;;  %vm831_vm1 = vcmp.eq.s32.totalorder %v816_v58, %v3485_v13  ;;  %vm832_vm3 = vcmp.eq.s32.totalorder %v816_v58, %v3497_v28  ;;  %v902_v61 = vrot.slane %v880_v59, %v3489_v22 }
  0x4a   : > { %vm3556_vm6 = vmpackc.low %vm832_vm3, %vm831_vm1  ;;  %v910_v63 = vcombine.high %v888_v56, %v888_v56  ;;  %v895_v9 = vrot.slane %v879_v5, %v3489_v22  ;;  %v881_v15 = vcombine.high %v879_v5, %v879_v5 }
  0x4b   : > { %vm946_vm7 = vcmp.eq.s32.totalorder %v917_v60, %v3485_v13  ;;  %vm947_vm8 = vcmp.eq.s32.totalorder %v917_v60, %v3497_v28  ;;  %v921_v2 = vrot.slane %v902_v61, %v3494_v26  ;;  %v912_v7 = vcombine.high %v902_v61, %v902_v61 }
  0x4c   : > { %vm3562_vm10 = vmpackc.low %vm947_vm8, %vm946_vm7  ;;  %v925_v3 = vrot.slane %v910_v63, %v3494_v26  ;;  %v933_v16 = vrot.slane %v895_v9, %v3494_v26  ;;  %v909_v17 = vrot.slane %v881_v15, %v3489_v22  ;;  %v911_v19 = vcombine.high %v895_v9, %v895_v9 }
  0x4d   : > { %vm948_vm11 = vcmp.eq.s32.totalorder %v921_v2, %v3485_v13  ;;  %vm949_vm13 = vcmp.eq.s32.totalorder %v921_v2, %v3497_v28  ;;  %v929_v14 = vrot.slane %v912_v7, %v3494_v26 }
  0x4e   : > { %vm3571_vm14 = vmpackc.low %vm949_vm13, %vm948_vm11  ;;  %vm950_vm1 = vcmp.eq.s32.totalorder %v925_v3, %v3485_v13  ;;  %vm951_vm3 = vcmp.eq.s32.totalorder %v925_v3, %v3497_v28  ;;  %v937_v21 = vrot.slane %v909_v17, %v3494_v26  ;;  %v941_v23 = vrot.slane %v911_v19, %v3494_v26 }
  0x4f   : > { %v3839_v8 = vsel %vm3571_vm14, 4294967295, %v3838_v8  ;;  %vm3578_vm7 = vmpackc.low %vm951_vm3, %vm950_vm1  ;;  %vm952_vm8 = vcmp.eq.s32.totalorder %v929_v14, %v3485_v13  ;;  %vm953_vm11 = vcmp.eq.s32.totalorder %v929_v14, %v3497_v28  ;;  %vm954_vm1 = vcmp.eq.s32.totalorder %v933_v16, %v3485_v13 }
  0x50   : > { %v3841_v12 = vsel %vm3578_vm7, 4294967295, %v3840_v12  ;;  %vm3587_vm13 = vmpackc.low %vm953_vm11, %vm952_vm8  ;;  %vm955_vm3 = vcmp.eq.s32.totalorder %v933_v16, %v3497_v28  ;;  %vm956_vm4 = vcmp.eq.s32.totalorder %v937_v21, %v3485_v13  ;;  %vm957_vm8 = vcmp.eq.s32.totalorder %v937_v21, %v3497_v28 }
  0x51   : > { %v3843_v18 = vsel %vm3587_vm13, 4294967295, %v3842_v18  ;;  %vm3593_vm2 = vmpackc.low %vm955_vm3, %vm954_vm1  ;;  %v913_v24 = vcombine.high %v909_v17, %v909_v17  ;;  %vm958_vm13 = vcmp.eq.s32.totalorder %v941_v23, %v3485_v13  ;;  %vm959_vm1 = vcmp.eq.s32.totalorder %v941_v23, %v3497_v28 }
  0x52   : > { %v3845_v20 = vsel %vm3593_vm2, 4294967295, %v3844_v20  ;;  %vm3601_vm11 = vmpackc.low %vm957_vm8, %vm956_vm4  ;;  %vm1044_vm4 = vcmask 130048   ;;  %vm2268_vm8 = vcmask 1045509  }
  0x53   : > { %vm3607_vm3 = vmpackc.low %vm959_vm1, %vm958_vm13  ;;  %v945_v29 = vrot.slane %v913_v24, %v3494_v26  ;;  %vm2265_vm13 = vcmask 1044484   ;;  %vm2274_vm1 = vcmask 1047559  }
  0x55   : > { %vm960_vm2 = vcmp.eq.s32.totalorder %v945_v29, %v3485_v13  ;;  %vm961_vm7 = vcmp.eq.s32.totalorder %v945_v29, %v3497_v28 }
  0x56   : > { %vm3614_vm14 = vmpackc.low %vm961_vm7, %vm960_vm2  ;;  %vm3852_vm2 = vmmov 0   ;;  %vm2262_vm7 = vcmask 1043459  }
 0x10a   : > { %v631_v31 = vpop.f32.mrb[0].mxu0 }
 0x10b   : > { %v995_v32 = vcombine.high %v631_v31, %v631_v31  ;;  %v1002_v33 = vrot.slane %v631_v31, %v3489_v22  ;;  %v2952_v35 = vpop.f32.mrb[1].mxu0  ;;  %v710_v36 = vpop.f32.mrb[0].mxu1 }
 0x10c   : > { %v2959_v40 = vpop.f32.mrb[1].mxu1  ;;  %v1629_v43 = vrot.slane %v710_v36, %v3489_v22  ;;  %v1622_v48 = vcombine.high %v710_v36, %v710_v36 }
 0x10d   : > { %v1010_v37 = vcombine.high %v1002_v33, %v1002_v33  ;;  %v1018_v38 = vrot.slane %v1002_v33, %v3489_v22  ;;  %v1009_v26 = vrot.slane %v995_v32, %v3489_v22 }
 0x10e   : > { %v1637_v46 = vcombine.high %v1629_v43, %v1629_v43  ;;  %v1645_v49 = vrot.slane %v1629_v43, %v3489_v22  ;;  %v1636_v51 = vrot.slane %v1622_v48, %v3489_v22 }
 0x10f   : > { %v1032_v13 = vrot.slane %v1010_v37, %v3489_v22  ;;  %2965 = vmatmul.mubr.msk.f32.vlgmr.msra.gmra.mrb[2].mxu0 %vm1044_vm4, %v1018_v38  ;;  %v1040_v28 = vcombine.high %v1018_v38, %v1018_v38  ;;  %v1011_v41 = vcombine.high %v1009_v26, %v1009_v26  ;;  %v1025_v39 = vrot.slane %v1009_v26, %v3489_v22 }
 0x110   : > { %3098 = vmatpush3.bf16.msk.msra.mxu0 %vm3513_vm15, %v3306_v34  ;;  %2978 = vmatprep.mubr.msk.f32.mxu0 %vm3852_vm2, %v3304_v6  ;;  %v1659_v50 = vrot.slane %v1637_v46, %v3489_v22  ;;  %vm3853_vm15 = vnez %v3839_v8  ;;  %v1667_v52 = vcombine.high %v1645_v49, %v1645_v49  ;;  %v1638_v53 = vcombine.high %v1636_v51, %v1636_v51 }
 0x111   : > { %2972 = vmatmul.mubr.msk.f32.vlgmr.msra.gmra.mrb[2].mxu1 %vm1044_vm4, %v1032_v13  ;;  %3102 = vmatprep.subr.bf16.mxu0 %v3302_v4  ;;  %v1042_v42 = vcombine.high %v1032_v13, %v1032_v13  ;;  %v1039_v44 = vrot.slane %v1011_v41, %v3489_v22  ;;  %v1041_v45 = vcombine.high %v1025_v39, %v1025_v39 }
 0x112   : > { %3101 = vmatpush3.bf16.msk.msra.mxu1 %vm3525_vm5, %v3306_v34  ;;  %2985 = vmatprep.mubr.msk.f32.mxu1 %vm3852_vm2, %v3304_v6  ;;  %vm3854_vm5 = vnez %v3841_v12  ;;  %v1669_v54 = vcombine.high %v1659_v50, %v1659_v50  ;;  %v1652_v55 = vrot.slane %v1636_v51, %v3489_v22  ;;  %v1666_v56 = vrot.slane %v1638_v53, %v3489_v22 }
 0x113   : > { %2979 = vmatmul.mubr.msk.f32.vlgmr.msra.gmra.mrb[4].mxu0 %vm1044_vm4, %v1040_v28  ;;  %3105 = vmatprep.subr.bf16.mxu1 %v3302_v4  ;;  %v1043_v47 = vcombine.high %v1039_v44, %v1039_v44  ;;  %v3307_v22 = vmov 0  }
 0x114   : > { %3104 = vmatpush3.bf16.msk.msra.mxu0 %vm3531_vm9, %v3306_v34  ;;  %2992 = vmatprep.mubr.msk.f32.mxu0 %vm3852_vm2, %v3304_v6  ;;  %vm3855_vm9 = vnez %v3843_v18  ;;  %v1668_v57 = vcombine.high %v1652_v55, %v1652_v55 }
 0x115   : > { %2986 = vmatmul.mubr.msk.f32.vlgmr.msra.gmra.mrb[4].mxu1 %vm1044_vm4, %v1042_v42  ;;  %3108 = vmatprep.subr.bf16.mxu0 %v3302_v4 }
 0x116   : > { %3107 = vmatpush3.bf16.msk.msra.mxu1 %vm3540_vm12, %v3306_v34  ;;  %2999 = vmatprep.mubr.msk.f32.mxu1 %vm3852_vm2, %v3304_v6  ;;  %vm3856_vm12 = vnez %v3845_v20 }
 0x117   : > { %2993 = vmatmul.mubr.msk.f32.vlgmr.msra.gmra.mrb[6].mxu0 %vm1044_vm4, %v1025_v39  ;;  %3111 = vmatprep.subr.bf16.mxu1 %v3302_v4 }
 0x118   : > { %3110 = vmatpush3.bf16.msk.msra.mxu0 %vm3547_vm0, %v3306_v34  ;;  %3006 = vmatprep.mubr.msk.f32.mxu0 %vm3852_vm2, %v3304_v6  ;;  %vm3857_vm0 = vcmask 64512  }
 0x119   : > { %3000 = vmatmul.mubr.msk.f32.vlgmr.msra.gmra.mrb[6].mxu1 %vm1044_vm4, %v1039_v44  ;;  %3114 = vmatprep.subr.bf16.mxu0 %v3302_v4 }
 0x11a   : > { %3113 = vmatpush3.bf16.msk.msra.mxu1 %vm3556_vm6, %v3306_v34  ;;  %3013 = vmatprep.mubr.msk.f32.mxu1 %vm3852_vm2, %v3304_v6  ;;  %vm3858_vm6 = vmmov %vm3857_vm0 }
 0x11b   : > { %3007 = vmatmul.mubr.msk.f32.vlgmr.msra.gmra.mrb[8].mxu0 %vm1044_vm4, %v1041_v45  ;;  %3117 = vmatprep.subr.bf16.mxu1 %v3302_v4 }
 0x11c   : > { %3116 = vmatpush3.bf16.msk.msra.mxu0 %vm3562_vm10, %v3306_v34  ;;  %3020 = vmatprep.mubr.msk.f32.mxu0 %vm3852_vm2, %v3304_v6  ;;  %vm2256_vm10 = vcmask 1041409  }
 0x11d   : > { %3014 = vmatmul.mubr.msk.f32.vlgmr.msra.gmra.mrb[8].mxu1 %vm1044_vm4, %v1043_v47  ;;  %3120 = vmatprep.subr.bf16.mxu0 %v3302_v4 }
 0x11e   : > { %3119 = vmatpush3.bf16.msk.msra.mxu1 %vm3853_vm15, %v3306_v34  ;;  %3027 = vmatprep.mubr.msk.f32.mxu1 %vm3852_vm2, %v3304_v6  ;;  %vm3860_vm15 = vmmov %vm3857_vm0 }
 0x11f   : > { %3021 = vmatmul.mubr.msk.f32.vlgmr.msra.gmra.mrb[10].mxu0 %vm1044_vm4, %v1645_v49  ;;  %3123 = vmatprep.subr.bf16.mxu1 %v3302_v4 }
 0x120   : > { %3122 = vmatpush3.bf16.msk.msra.mxu0 %vm3854_vm5, %v3306_v34  ;;  %3034 = vmatprep.mubr.msk.f32.mxu0 %vm3852_vm2, %v3304_v6  ;;  %vm3861_vm5 = vmmov %vm3857_vm0 }
 0x121   : > { %3028 = vmatmul.mubr.msk.f32.vlgmr.msra.gmra.mrb[10].mxu1 %vm1044_vm4, %v1659_v50  ;;  %3126 = vmatprep.subr.bf16.mxu0 %v3302_v4 }
 0x122   : > { %3125 = vmatpush3.bf16.msk.msra.mxu1 %vm3855_vm9, %v3306_v34  ;;  %3041 = vmatprep.mubr.msk.f32.mxu1 %vm3852_vm2, %v3304_v6  ;;  %vm3862_vm9 = vmmov %vm3857_vm0 }
 0x123   : > { %3035 = vmatmul.mubr.msk.f32.vlgmr.msra.gmra.mrb[12].mxu0 %vm1044_vm4, %v1667_v52  ;;  %3129 = vmatprep.subr.bf16.mxu1 %v3302_v4 }
 0x124   : > { %3128 = vmatpush3.bf16.msk.msra.mxu0 %vm3856_vm12, %v3306_v34  ;;  %3048 = vmatprep.mubr.msk.f32.mxu0 %vm3852_vm2, %v3304_v6 }
 0x125   : > { %3042 = vmatmul.mubr.msk.f32.vlgmr.msra.gmra.mrb[12].mxu1 %vm1044_vm4, %v1669_v54  ;;  %3132 = vmatprep.subr.bf16.mxu0 %v3302_v4 }
 0x126   : > { %3131 = vmatpush3.bf16.msk.msra.mxu1 %vm3601_vm11, %v3306_v34  ;;  %3055 = vmatprep.mubr.msk.f32.mxu1 %vm3852_vm2, %v3304_v6  ;;  %vm2271_vm11 = vcmask 1046534  }
 0x127   : > { %3049 = vmatmul.mubr.msk.f32.vlgmr.msra.gmra.mrb[14].mxu0 %vm1044_vm4, %v1652_v55  ;;  %3135 = vmatprep.subr.bf16.mxu1 %v3302_v4  ;;  %v1670_v4 = vcombine.high %v1666_v56, %v1666_v56 }
 0x128   : > { %3134 = vmatpush3.bf16.msk.msra.mxu0 %vm3607_vm3, %v3306_v34  ;;  %3062 = vmatprep.mubr.msk.f32.mxu0 %vm3852_vm2, %v3304_v6 }
 0x129   : > { %3056 = vmatmul.mubr.msk.f32.vlgmr.msra.gmra.mrb[14].mxu1 %vm1044_vm4, %v1666_v56  ;;  %3072 = vmatprep.subr.mxu0 %v3304_v6 }
 0x12a   : > { %3137 = vmatpush3.bf16.msk.msra.mxu1 %vm3614_vm14, %v3306_v34  ;;  %3069 = vmatprep.mubr.msk.f32.mxu1 %vm3852_vm2, %v3304_v6  ;;  %v553_v34 = vld [vmem:[%s3438_s18] sm:$0xff]  ;;  %vm2259_vm14 = vcmask 1042434  }
 0x12b   : > { %3063 = vmatmul.mubr.msk.f32.vlgmr.msra.gmra.mrb[16].mxu0 %vm1044_vm4, %v1668_v57  ;;  %3077 = vmatprep.subr.mxu1 %v3304_v6 }
 0x12c   : > { %3074 = vmatprep.mubr.msk.f32.mxu0 %vm3852_vm2, %v3304_v6  ;;  %3219 = vset.pattern.permute.xlu0 %v3307_v22 }
 0x12d   : > { %3070 = vmatmul.mubr.msk.f32.vlgmr.msra.gmra.mrb[16].mxu1 %vm1044_vm4, %v1670_v4  ;;  %3220 = vset.pattern.permute.xlu1 %v3307_v22  ;;  %vm3859_vm4 = vmmov %vm3857_vm0 }
 0x12e   : > { %3079 = vmatprep.mubr.msk.f32.mxu1 %vm3852_vm2, %v3304_v6  ;;  %2405 = vperm.xlu0 %3219, %v553_v34   ;;  %v2881_v34 = vld [vmem:[%s524_s17] ss:$0 sm:$0xff]  ;;  %vm2440_vm2 = vcmask 7168  }
 0x131   : > { %3073 = vmatpush3.xpose.msk.msra.mxu0 %vm3857_vm0, %v3473_v11  ;;  %vm3863_vm0 = vcmask (!%p2883_p12), 64512  }
 0x134   : > { %3075 = vmatmul.mubr.msk.f32.vlgmr.msra.gmra.mrb[18].mxu0 %vm3858_vm6, %v3470_v10 }
 0x1e2   : > { %v1113_v58 = vpop.f32.mrb[2].mxu0 }
 0x1e3   : > { %v2966_v59 = vpop.f32.mrb[3].mxu0 }
 0x1e4   : > { %v1185_v60 = vpop.f32.mrb[2].mxu1 }
 0x1e5   : > { %v2255_v61 = vrot.slane %v1185_v60, 7  ;;  %v2973_v62 = vpop.f32.mrb[3].mxu1 }
 0x1e6   : > { %v1257_v63 = vpop.f32.mrb[4].mxu0 }
 0x1e7   : > { %v2257_v6 = vsel %vm2256_vm10, %v2255_v61, %v1113_v58  ;;  %v2258_v0 = vrot.slane %v1257_v63, 6  ;;  %v2980_v11 = vpop.f32.mrb[5].mxu0  ;;  %v2406_v58 = vpop.permute.xlu0 %2405 }
 0x1e8   : > { %v1329_v1 = vpop.f32.mrb[4].mxu1  ;;  %v2414_v59 = vmul.f32 %v2881_v34, %v2406_v58 }
 0x1e9   : > { %v2260_v10 = vsel %vm2259_vm14, %v2258_v0, %v2257_v6  ;;  %v2261_v2 = vrot.slane %v1329_v1, 5  ;;  %v2987_v3 = vpop.f32.mrb[5].mxu1  ;;  %v2417_v6 = vld [vmem:[#allocation2] sm:$0xff] }
 0x1ea   : > { %v1401_v5 = vpop.f32.mrb[6].mxu0  ;;  %vm2415_vm3 = vcmp.gt.f32.partialorder %v2414_v59, 0.0 }
 0x1eb   : > { %v2263_v7 = vsel %vm2262_vm7, %v2261_v2, %v2260_v10  ;;  %v2264_v8 = vrot.slane %v1401_v5, 4  ;;  %v2994_v9 = vpop.f32.mrb[7].mxu0  ;;  %v548_v2 = vld [vmem:[%s3450_s15] sm:$0xff] }
 0x1ec   : > { %v1473_v12 = vpop.f32.mrb[6].mxu1  ;;  %3078 = vmatpush3.msra.mxu1 %v548_v2 }
 0x1ed   : > { %v2266_v14 = vsel %vm2265_vm13, %v2264_v8, %v2263_v7  ;;  %v2267_v15 = vrot.slane %v1473_v12, 3  ;;  %v3001_v16 = vpop.f32.mrb[7].mxu1 }
 0x1ee   : > { %v1545_v17 = vpop.f32.mrb[8].mxu0 }
 0x1ef   : > { %v2269_v18 = vsel %vm2268_vm8, %v2267_v15, %v2266_v14  ;;  %v2270_v19 = vrot.slane %v1545_v17, 2  ;;  %v3008_v20 = vpop.f32.mrb[9].mxu0  ;;  %v2434_v15 = vld [vmem:[#allocation3] sm:$0xff] }
 0x1f0   : > { %v1617_v21 = vpop.f32.mrb[8].mxu1 }
 0x1f1   : > { %v2273_v23 = vrot.slane %v1617_v21, 1  ;;  %v3015_v24 = vpop.f32.mrb[9].mxu1  ;;  %v2272_v25 = vsel %vm2271_vm11, %v2270_v19, %v2269_v18  ;;  %v2442_v19 = vld [vmem:[#allocation4] sm:$0xff] }
 0x1f2   : > { %v1739_v27 = vpop.f32.mrb[10].mxu0 }
 0x1f3   : > { %v3022_v29 = vpop.f32.mrb[11].mxu0  ;;  %v2275_v30 = vsel %vm2274_vm1, %v2273_v23, %v2272_v25 }
 0x1f4   : > { %v1811_v31 = vpop.f32.mrb[10].mxu1  ;;  %v3308_v29 = vmov (!%p2883_p12), 0  }
 0x1f5   : > { %v2355_v32 = vrot.slane %v1811_v31, 7  ;;  %v3029_v33 = vpop.f32.mrb[11].mxu1 }
 0x1f6   : > { %v1883_v35 = vpop.f32.mrb[12].mxu0 }
 0x1f7   : > { %v2356_v36 = vsel %vm2256_vm10, %v2355_v32, %v1739_v27  ;;  %v2357_v37 = vrot.slane %v1883_v35, 6  ;;  %v3036_v38 = vpop.f32.mrb[13].mxu0 }
 0x1f8   : > { %v1955_v40 = vpop.f32.mrb[12].mxu1 }
 0x1f9   : > { %v2358_v26 = vsel %vm2259_vm14, %v2357_v37, %v2356_v36  ;;  %v2359_v13 = vrot.slane %v1955_v40, 5  ;;  %v3043_v28 = vpop.f32.mrb[13].mxu1 }
 0x1fa   : > { %v2027_v41 = vpop.f32.mrb[14].mxu0 }
 0x1fb   : > { %v2360_v42 = vsel %vm2262_vm7, %v2359_v13, %v2358_v26  ;;  %v2361_v39 = vrot.slane %v2027_v41, 4  ;;  %v3050_v43 = vpop.f32.mrb[15].mxu0 }
 0x1fc   : > { %v2099_v44 = vpop.f32.mrb[14].mxu1 }
 0x1fd   : > { %v2362_v45 = vsel %vm2265_vm13, %v2361_v39, %v2360_v42  ;;  %v2363_v46 = vrot.slane %v2099_v44, 3  ;;  %v3057_v47 = vpop.f32.mrb[15].mxu1 }
 0x1fe   : > { %v2171_v48 = vpop.f32.mrb[16].mxu0 }
 0x1ff   : > { %v2364_v49 = vsel %vm2268_vm8, %v2363_v46, %v2362_v45  ;;  %v2365_v50 = vrot.slane %v2171_v48, 2  ;;  %v3064_v51 = vpop.f32.mrb[17].mxu0 }
 0x200   : > { %v2243_v52 = vpop.f32.mrb[16].mxu1 }
 0x201   : > { %v2367_v53 = vrot.slane %v2243_v52, 1  ;;  %v3071_v54 = vpop.f32.mrb[17].mxu1  ;;  %v2366_v55 = vsel %vm2271_vm11, %v2365_v50, %v2364_v49 }
 0x203   : > { %v2368_v56 = vsel %vm2274_vm1, %v2367_v53, %v2366_v55 }
 0x204   : > { %2370 = vxpose.xlu0.b32.start.end [1/1] (short) (narrow) %v2368_v56, 8 }
 0x207   : > { %v2343_v57 = vpop.f32.mrb[18].mxu0 }
 0x208   : > { %v2344_v4 = vadd.f32 %v2343_v57, %v2275_v30  ;;  %v3076_v22 = vpop.f32.mrb[19].mxu0 }
 0x284   : > { %v2386_v60 = vpop.trf.xlu0 }
 0x285   : > { %v2402_v61 = vadd.f32 %v2386_v60, %v2344_v4 }
 0x287   : > { %v2416_v62 = vsel %vm2415_vm3, %v2402_v61, -1e+30 }
 0x288   : > { %v2418_v63 = vsel %vm3859_vm4, %v2416_v62, -inf }
 0x289   : > { %2419 = vmax.xlane.f32.xlu1 %v2418_v63 }
 0x316   : > { %v2420_v0 = vpop.xlane.xlu1 %2419 }
 0x317   : > { %v2421_v11 = vmax.f32 %v2417_v6, %v2420_v0 }
 0x319   : > { %v2422_v1 = vsub.f32 %v2417_v6, %v2421_v11  ;;  %2524 = vst.msk [vmem:[#allocation2] sm:$0xff] %vm2440_vm2, %v2421_v11  ;;  %2427 = vperm.xlu1 %3220, %v2421_v11  }
 0x31b   : > { %v2423_v10 = vmul.f32 1.442695, %v2422_v1 }
 0x31d   : > { %3221 = vpow2.f32 %v2423_v10 }
 0x327   : > { %v3222_v3 = vpop.eup %3221 }
 0x328   : > { %2445 = vperm.xlu0 %3219, %v3222_v3   ;;  %v2435_v16 = vmul.f32 %v3222_v3, %v2434_v15 }
 0x32c   : > { %3225 = vset.pattern.permute.xlu0 (!%p2883_p12), %v3308_v29 }
 0x398   : > { %v2428_v5 = vpop.permute.xlu1 %2427 }
 0x399   : > { %v2430_v7 = vsub.f32 %v2416_v62, %v2428_v5 }
 0x39b   : > { %v2431_v8 = vmul.f32 1.442695, %v2430_v7 }
 0x39d   : > { %3223 = vpow2.f32 %v2431_v8 }
 0x3a7   : > { %v3224_v9 = vpop.eup %3223  ;;  %v2446_v20 = vpop.permute.xlu0 %2445 }
 0x3a8   : > { %v2433_v12 = vmul.f32 %v3224_v9, %v2414_v59  ;;  %v2448_v21 = vmul.f32 %v2446_v20, %v2442_v19 }
 0x3aa   : > { %3080 = vmatmul.mubr.msk.f32.vlgmr.msra.gmra.mrb[18].mxu1 %vm3860_vm15, %v2433_v12  ;;  %v2436_v14 = vsel %vm3861_vm5, %v2433_v12, 0.0 }
 0x3ab   : > { %2437 = vadd.xlane.f32.xlu1 %v2436_v14 }
 0x438   : > { %v2438_v17 = vpop.xlane.xlu1 %2437 }
 0x439   : > { %v2439_v18 = vadd.f32 %v2438_v17, %v2435_v16 }
 0x43b   : > { %2441 = vst.msk [vmem:[#allocation3] sm:$0xff] %vm2440_vm2, %v2439_v18 }
 0x442   : > { %v2529_v27 = vld [vmem:[#allocation3] sm:$0xff] (!%p2883_p12) }
 0x443   : > { %vm2530_vm12 = vcmp.eq.f32.partialorder (!%p2883_p12), %v2529_v27, 0.0 }
 0x444   : > { %v2531_v30 = vsel (!%p2883_p12), %vm2530_vm12, 1.0, %v2529_v27 }
 0x445   : > { %3226 = vrcp.f32 (!%p2883_p12), %v2531_v30 }
 0x44f   : > { %v3227_v31 = vpop.eup (!%p2883_p12), %3226 }
 0x450   : > { %2536 = vperm.xlu0 (!%p2883_p12), %3225, %v3227_v31  }
 0x47a   : > { %2528 = sbr.rel (%p2883_p12) target bundleno = 1235 (0x4d3), region = 56 }
 0x47d   : > { %v2518_v23 = vpop.f32.mrb[18].mxu1 }
 0x47e   : > { %v2522_v24 = vadd.f32 %v2518_v23, %v2448_v21  ;;  %v3081_v25 = vpop.f32.mrb[19].mxu1 }
 0x480   : > { %2523 = vst.msk [vmem:[#allocation4] sm:$0xff] %vm3862_vm9, %v2522_v24 }
 0x487   : > { %v2532_v32 = vld [vmem:[#allocation4] sm:$0xff] }
 0x4cf   : > { %v2537_v33 = vpop.permute.xlu0 %2536 }
 0x4d0   : > { %v2539_v35 = vmul.f32 %v2537_v33, %v2532_v32 }
 0x4d2   : > { %2540 = vst.msk [vmem:[%s3433_s20] sm:$0xff] %vm3863_vm0, %v2539_v35 }
 0x4d3 PF: > { %s3864_s11 = sld [smem:[#allocation9_spill]]  ;;  %s3865_s24 = sld [smem:[#allocation5_spill]] }
 0x4d4   : > { %s3866_s25 = sld [smem:[#allocation6_spill]]  ;;  %s3867_s26 = sld [smem:[#allocation7_spill]] }
 0x4d5   : > { %s3868_s27 = sld [smem:[#allocation8_spill]]  ;;  %s3869_s28 = sld [smem:[#allocation10_spill]] }
 0x4d6   : > { %s3870_s29 = sld [smem:[#allocation11_spill]]  ;;  %s3871_s30 = sld [smem:[#allocation12_spill]] }
 0x4d7   : > { %s3872_s8 = sld [smem:[#allocation13_spill]] }
 0x4d9   : > { %s17_s9 = sadd.s32 1, %s3864_s11  }
 0x4da   : > { %p14_p13 = scmp.ge.s32.totalorder %s17_s9, 34  }
 0x4dc   :  { %16 = sbr.rel (!%p14_p13) target bundleno = 6 (0x6), region = 104 }

</bundles_post_ra>
